<compile_context>
chip_gen: v5e
topology: v5e:2x2
jax: 0.10.0
libtpu: 0.0.40
codegen_flags: <defaults>
</compile_context>

<pallas_src>
import functools

import jax
import jax.numpy as jnp
from jax.experimental import pallas as pl
from jax.experimental.pallas import tpu as pltpu


# ------------------------------ fused kernel --------------------------------

def _bottleneck_kernel(x_ref, w1s_ref, b1s_ref, w2_ref, b2_ref, w3_ref, b3_ref,
                       wse1_ref, wse2_ref, o_ref, ypad_ref,
                       *, bb, H, W, Cmid, Cexp, has_sc):
    M = bb * H * W
    Cin = x_ref.shape[-1]

    xb = x_ref[...].reshape(M, Cin)                       # (M, Cin) bf16

    # ---- fused [shortcut-1x1 | conv1-1x1] matmul (BN folded into w/b) -------
    y1s = jnp.dot(xb, w1s_ref[...], preferred_element_type=jnp.float32)
    y1s = y1s + b1s_ref[...]
    if has_sc:
        s = y1s[:, :Cexp]                                 # shortcut conv + BN
        y1 = jnp.maximum(y1s[:, Cexp:], 0.0)              # conv1 + bn1 + ReLU
    else:
        s = xb.astype(jnp.float32)                        # identity shortcut
        y1 = jnp.maximum(y1s, 0.0)

    # ---- stash y1 (bf16) into the zero-halo padded buffer -------------------
    # Only the halo strips (row 0, row H+1, col 0, col W+1) are zeroed each
    # step; the interior is fully overwritten.  NOTE: do not replace this with
    # a program_id==0 one-time zero — on a megacore 'parallel' split the core
    # that never sees step 0 would read an uninitialized halo.
    zrow = jnp.zeros((bb, 1, W + 2, Cmid), ypad_ref.dtype)
    zcol = jnp.zeros((bb, H, 1, Cmid), ypad_ref.dtype)
    ypad_ref[:, 0:1, :, :] = zrow
    ypad_ref[:, H + 1:H + 2, :, :] = zrow
    ypad_ref[:, 1:1 + H, 0:1, :] = zcol
    ypad_ref[:, 1:1 + H, W + 1:W + 2, :] = zcol
    ypad_ref[:, 1:1 + H, 1:1 + W, :] = (
        y1.reshape(bb, H, W, Cmid).astype(ypad_ref.dtype))

    # ---- grouped 3x3 conv + bn2 + ReLU: 9 accumulating tap matmuls ----------
    # (no im2col scratch, no 64-lane masked column-band stores)
    xp = ypad_ref[...]                                    # (bb, H+2, W+2, Cmid)
    acc = jnp.zeros((M, Cmid), jnp.float32)
    for k in range(9):                                    # static unroll
        di, dj = divmod(k, 3)
        tap = xp[:, di:di + H, dj:dj + W, :].reshape(M, Cmid)
        acc = acc + jnp.dot(tap, w2_ref[k], preferred_element_type=jnp.float32)
    y2 = jnp.maximum(acc + b2_ref[...], 0.0)              # (M, Cmid)

    # ---- conv3 (1x1) + bn3 (no ReLU) -----------------------------------------
    y3 = jnp.dot(y2.astype(jnp.bfloat16), w3_ref[...],
                 preferred_element_type=jnp.float32) + b3_ref[...]   # (M, Cexp)

    # ---- SEBlock: per-image squeeze -> 1x1 -> ReLU -> 1x1 -> sigmoid ---------
    y3i = y3.reshape(bb, H * W, Cexp)
    pooled = jnp.mean(y3i, axis=1)                        # (bb, Cexp) f32
    z = jnp.maximum(jnp.dot(pooled, wse1_ref[...],
                            preferred_element_type=jnp.float32), 0.0)
    gate = jax.nn.sigmoid(jnp.dot(z, wse2_ref[...],
                                  preferred_element_type=jnp.float32))

    # ---- excite + residual add + final ReLU ----------------------------------
    out = y3i * gate[:, None, :] + s.reshape(bb, H * W, Cexp)
    o_ref[...] = jnp.maximum(out, 0.0).astype(o_ref.dtype)


# --------------------- one-time weight preparation (hoisted) -----------------

def _fold_bn(w_oihw, b_o, bn, eps=1e-5):
    gamma, beta, mean, var = bn
    scale = gamma / jnp.sqrt(var + eps)
    return w_oihw * scale[:, None, None, None], (b_o - mean) * scale + beta


def prepare_params(p, *, groups=32, eps=1e-5, compute_dtype=jnp.bfloat16):
    """Fold BN, densify the grouped conv, fuse conv1|shortcut, lay out weights.

    Runs once outside the hot path; the jitted forward only consumes the
    already-folded, already-transposed tensors (pure-array dict, jit-friendly).
    """
    Cmid, Cin = p["conv1_w"].shape[:2]
    Cexp = p["conv3_w"].shape[0]

    w1f, b1f = _fold_bn(p["conv1_w"], p["conv1_b"], p["bn1"], eps)
    w1 = w1f.reshape(Cmid, Cin).T                           # (Cin, Cmid)
    b1 = b1f.reshape(1, Cmid)

    # grouped 3x3 -> block-diagonal dense, BN-folded, per-tap (in, out) layout
    cpg = Cmid // groups
    wg = p["conv2_w"].reshape(groups, cpg, cpg, 3, 3)
    eye = jnp.eye(groups, dtype=jnp.float32)
    wdense = (eye[:, None, :, None, None, None]
              * wg[:, :, None, :, :, :]).reshape(Cmid, Cmid, 3, 3)   # (O,I,kh,kw)
    w2f, b2f = _fold_bn(wdense, p["conv2_b"], p["bn2"], eps)
    w2 = jnp.transpose(w2f, (2, 3, 1, 0)).reshape(9, Cmid, Cmid)     # (tap,I,O)

    w3f, b3f = _fold_bn(p["conv3_w"], p["conv3_b"], p["bn3"], eps)

    if Cin != Cexp:                                         # projection shortcut
        wsf, bsf = _fold_bn(p["sc_w"], p["sc_b"], p["bn_sc"], eps)
        wsc = wsf.reshape(Cexp, Cin).T                      # (Cin, Cexp)
        bsc = bsf.reshape(1, Cexp)
        # shortcut columns FIRST: the 128-multiple Cexp slab stays vreg-aligned
        w1s = jnp.concatenate([wsc, w1], axis=1)            # (Cin, Cexp+Cmid)
        b1s = jnp.concatenate([bsc, b1], axis=1)
    else:
        w1s, b1s = w1, b1

    red = p["se1_w"].shape[0]
    return dict(
        w1s=w1s.astype(compute_dtype),
        b1s=b1s.astype(jnp.float32),
        w2=w2.astype(compute_dtype),
        b2=b2f.reshape(1, Cmid).astype(jnp.float32),
        w3=w3f.reshape(Cexp, Cmid).T.astype(compute_dtype),
        b3=b3f.reshape(1, Cexp).astype(jnp.float32),
        wse1=p["se1_w"].reshape(red, Cexp).T.astype(jnp.float32),
        wse2=p["se2_w"].reshape(Cexp, red).T.astype(jnp.float32),
    )


# --------------------------------- wrappers -----------------------------------

def _pick_batch_block(N, hw, target_m=512):
    """Largest divisor of N with bb*hw <= max(target_m, hw)."""
    bb = 1
    for d in range(1, N + 1):
        if N % d == 0 and d * hw <= max(target_m, hw):
            bb = d
    return bb


def bottleneck_forward_nhwc(x_nhwc, prep, *, out_dtype=jnp.float32,
                            batch_block=None):
    """Hot path: NHWC activations in, NHWC out (use bf16 in, bf16 out to chain)."""
    N, H, W, Cin = x_nhwc.shape
    Cmid, Cexp = prep["w3"].shape
    red = prep["wse1"].shape[1]
    w1s_cols = prep["w1s"].shape[1]
    has_sc = (w1s_cols == Cmid + Cexp)

    bb = batch_block if batch_block is not None else _pick_batch_block(N, H * W)
    assert N % bb == 0, "batch_block must divide the batch"
    M = bb * H * W

    x = x_nhwc.astype(jnp.bfloat16).reshape(N, H * W, Cin)

    # explicit VMEM budget: double-buffered I/O blocks + weights + scratch + temps
    out_bytes = jnp.dtype(out_dtype).itemsize
    est = (2 * M * Cin * 2                                  # x block (bf16, 2-buf)
           + 2 * M * Cexp * out_bytes                       # out block (2-buf)
           + 2 * 2 * (Cin * w1s_cols + 9 * Cmid * Cmid + Cmid * Cexp)
           + 2 * 4 * (w1s_cols + Cmid + Cexp + 2 * Cexp * red)
           + bb * (H + 2) * (W + 2) * Cmid * 2              # ypad scratch (bf16)
           + 4 * M * (Cexp + Cmid) * 4)                     # f32 temps headroom
    vmem_limit = int(min(max(2 * est, 32 << 20), 100 << 20))

    in_specs = [
        pl.BlockSpec((bb, H * W, Cin), lambda n: (n, 0, 0)),
        pl.BlockSpec((Cin, w1s_cols), lambda n: (0, 0)),
        pl.BlockSpec((1, w1s_cols), lambda n: (0, 0)),
        pl.BlockSpec((9, Cmid, Cmid), lambda n: (0, 0, 0)),
        pl.BlockSpec((1, Cmid), lambda n: (0, 0)),
        pl.BlockSpec((Cmid, Cexp), lambda n: (0, 0)),
        pl.BlockSpec((1, Cexp), lambda n: (0, 0)),
        pl.BlockSpec((Cexp, red), lambda n: (0, 0)),
        pl.BlockSpec((red, Cexp), lambda n: (0, 0)),
    ]

    out = pl.pallas_call(
        functools.partial(_bottleneck_kernel, bb=bb, H=H, W=W,
                          Cmid=Cmid, Cexp=Cexp, has_sc=has_sc),
        out_shape=jax.ShapeDtypeStruct((N, H * W, Cexp), out_dtype),
        grid=(N // bb,),
        in_specs=in_specs,
        out_specs=pl.BlockSpec((bb, H * W, Cexp), lambda n: (n, 0, 0)),
        scratch_shapes=[
            pltpu.VMEM((bb, H + 2, W + 2, Cmid), jnp.bfloat16),   # padded y1
        ],
        compiler_params=pltpu.CompilerParams(
            dimension_semantics=("parallel",),
            vmem_limit_bytes=vmem_limit),
    )(x, prep["w1s"], prep["b1s"], prep["w2"], prep["b2"],
      prep["w3"], prep["b3"], prep["wse1"], prep["wse2"])

    return out.reshape(N, H, W, Cexp)


def bottleneck_forward(x_nchw, prep, *, out_dtype=jnp.float32):
    """NCHW convenience wrapper (demo / reference comparison only).

    When chaining blocks, keep activations NHWC bf16 and call
    bottleneck_forward_nhwc directly to skip these layout shuffles.
    """
    x = jnp.transpose(x_nchw, (0, 2, 3, 1))
    out = bottleneck_forward_nhwc(x, prep, out_dtype=out_dtype)
    return jnp.transpose(out, (0, 3, 1, 2))


# --------------------------- parameter construction --------------------------

def init_params(key, in_ch, out_ch, *, groups=32, reduction=16, expansion=2):
    exp_ch = out_ch * expansion
    red_ch = exp_ch // reduction
    ks = iter(jax.random.split(key, 32))

    def w(shape, fan_in):
        return (jax.random.normal(next(ks), shape, jnp.float32)
                / jnp.sqrt(jnp.float32(fan_in)))

    def bn(c):
        return (1.0 + 0.1 * jax.random.normal(next(ks), (c,), jnp.float32),   # gamma
                0.1 * jax.random.normal(next(ks), (c,), jnp.float32),         # beta
                0.1 * jax.random.normal(next(ks), (c,), jnp.float32),         # mean
                1.0 + 0.1 * jax.random.uniform(next(ks), (c,), jnp.float32))  # var

    return dict(
        conv1_w=w((out_ch, in_ch, 1, 1), in_ch),
        conv1_b=0.1 * jax.random.normal(next(ks), (out_ch,), jnp.float32),
        bn1=bn(out_ch),
        conv2_w=w((out_ch, out_ch // groups, 3, 3), 9 * out_ch // groups),
        conv2_b=0.1 * jax.random.normal(next(ks), (out_ch,), jnp.float32),
        bn2=bn(out_ch),
        conv3_w=w((exp_ch, out_ch, 1, 1), out_ch),
        conv3_b=0.1 * jax.random.normal(next(ks), (exp_ch,), jnp.float32),
        bn3=bn(exp_ch),
        se1_w=w((red_ch, exp_ch, 1, 1), exp_ch),
        se2_w=w((exp_ch, red_ch, 1, 1), red_ch),
        sc_w=w((exp_ch, in_ch, 1, 1), in_ch),
        sc_b=0.1 * jax.random.normal(next(ks), (exp_ch,), jnp.float32),
        bn_sc=bn(exp_ch),
    )


# ------------------------- pure-JAX reference (NCHW) -------------------------

def _ref_conv(x, w, b, stride=1, padding=0, groups=1):
    out = jax.lax.conv_general_dilated(
        x, w, (stride, stride), [(padding, padding)] * 2,
        dimension_numbers=("NCHW", "OIHW", "NCHW"),
        feature_group_count=groups)
    return out if b is None else out + b[None, :, None, None]


def _ref_bn(x, bn, eps=1e-5):
    g, b, m, v = (t[None, :, None, None] for t in bn)
    return (x - m) / jnp.sqrt(v + eps) * g + b


def bottleneck_reference(x, p, *, groups=32):
    relu = lambda t: jnp.maximum(t, 0.0)
    out = relu(_ref_bn(_ref_conv(x, p["conv1_w"], p["conv1_b"]), p["bn1"]))
    out = relu(_ref_bn(_ref_conv(out, p["conv2_w"], p["conv2_b"],
                                 padding=1, groups=groups), p["bn2"]))
    out = _ref_bn(_ref_conv(out, p["conv3_w"], p["conv3_b"]), p["bn3"])
    pooled = jnp.mean(out, axis=(2, 3), keepdims=True)
    z = relu(_ref_conv(pooled, p["se1_w"], None))
    gate = jax.nn.sigmoid(_ref_conv(z, p["se2_w"], None))
    out = out * gate
    if x.shape[1] != out.shape[1]:
        sc = _ref_bn(_ref_conv(x, p["sc_w"], p["sc_b"]), p["bn_sc"])
    else:
        sc = x
    return relu(out + sc)


# ----------------------------------- main ------------------------------------

if __name__ == "__main__":
    key = jax.random.PRNGKey(0)
    kx, kp = jax.random.split(key)

    # groups=32 requires channels divisible by 32 -> small-but-valid shapes
    N, Cin, H, W = 2, 64, 8, 8
    out_ch, groups = 64, 32

    x = jax.random.normal(kx, (N, Cin, H, W), jnp.float32)
    params = init_params(kp, Cin, out_ch, groups=groups)

    prep = prepare_params(params, groups=groups)   # one-time, outside hot path
    fwd = jax.jit(bottleneck_forward)
    out = jax.block_until_ready(fwd(x, prep))

    ref = bottleneck_reference(x, params, groups=groups)
    assert out.shape == ref.shape == (N, out_ch * 2, H, W), out.shape
    err = float(jnp.max(jnp.abs(out - ref)))
    # bf16 MXU inputs (f32 accumulation/epilogue) -> loose-but-safe tolerance.
    assert jnp.allclose(out, ref, rtol=5e-2, atol=5e-2), err

    print("KERNEL_OK")
</pallas_src>

<mosaic_0001>
module attributes {stable_mosaic.version = 11 : i64} {
  func.func @_bottleneck_kernel(%arg0: i32, %arg1: memref<2x64x64xbf16, #tpu.memory_space<vmem>>, %arg2: memref<64x192xbf16, #tpu.memory_space<vmem>>, %arg3: memref<1x192xf32, #tpu.memory_space<vmem>>, %arg4: memref<9x64x64xbf16, #tpu.memory_space<vmem>>, %arg5: memref<1x64xf32, #tpu.memory_space<vmem>>, %arg6: memref<64x128xbf16, #tpu.memory_space<vmem>>, %arg7: memref<1x128xf32, #tpu.memory_space<vmem>>, %arg8: memref<128x8xf32, #tpu.memory_space<vmem>>, %arg9: memref<8x128xf32, #tpu.memory_space<vmem>>, %arg10: memref<2x64x128xf32, #tpu.memory_space<vmem>>, %arg11: memref<2x10x10x64xbf16, #tpu.memory_space<vmem>>) attributes {dimension_semantics = [#tpu.dimension_semantics<parallel>], iteration_bounds = array<i64: 1>, scalar_prefetch = 0 : i64, scratch_operands = 1 : i64, tpu.core_type = #tpu.core_type<tc>, window_params = [{transform_indices = @transform_0, window_bounds = array<i64: 2, 64, 64>}, {pipeline_mode = #tpu.pipeline_mode<synchronous>, transform_indices = @transform_1, window_bounds = array<i64: 64, 192>}, {pipeline_mode = #tpu.pipeline_mode<synchronous>, transform_indices = @transform_2, window_bounds = array<i64: 1, 192>}, {pipeline_mode = #tpu.pipeline_mode<synchronous>, transform_indices = @transform_3, window_bounds = array<i64: 9, 64, 64>}, {pipeline_mode = #tpu.pipeline_mode<synchronous>, transform_indices = @transform_4, window_bounds = array<i64: 1, 64>}, {pipeline_mode = #tpu.pipeline_mode<synchronous>, transform_indices = @transform_5, window_bounds = array<i64: 64, 128>}, {pipeline_mode = #tpu.pipeline_mode<synchronous>, transform_indices = @transform_6, window_bounds = array<i64: 1, 128>}, {pipeline_mode = #tpu.pipeline_mode<synchronous>, transform_indices = @transform_7, window_bounds = array<i64: 128, 8>}, {pipeline_mode = #tpu.pipeline_mode<synchronous>, transform_indices = @transform_8, window_bounds = array<i64: 8, 128>}, {transform_indices = @transform_9, window_bounds = array<i64: 2, 64, 128>}]} {
    %c0 = arith.constant 0 : index
    %c0_0 = arith.constant 0 : index
    %c0_1 = arith.constant 0 : index
    %0 = vector.load %arg1[%c0, %c0_0, %c0_1] : memref<2x64x64xbf16, #tpu.memory_space<vmem>>, vector<2x64x64xbf16>
    %1 = vector.shape_cast %0 : vector<2x64x64xbf16> to vector<128x64xbf16>
    %c0_2 = arith.constant 0 : index
    %c0_3 = arith.constant 0 : index
    %2 = vector.load %arg2[%c0_2, %c0_3] : memref<64x192xbf16, #tpu.memory_space<vmem>>, vector<64x192xbf16>
    %cst = arith.constant dense<0.000000e+00> : vector<128x192xf32>
    %3 = tpu.matmul %1, %2, %cst {dimension_numbers = #tpu.dot_dimension_numbers<[1], [0], [0], [1], [0, 0, 1, 1], [], []>} : vector<128x64xbf16>, vector<64x192xbf16>, vector<128x192xf32> -> vector<128x192xf32>
    %c0_4 = arith.constant 0 : index
    %c0_5 = arith.constant 0 : index
    %4 = vector.load %arg3[%c0_4, %c0_5] : memref<1x192xf32, #tpu.memory_space<vmem>>, vector<1x192xf32>
    %5 = vector.broadcast %4 : vector<1x192xf32> to vector<128x192xf32>
    %6 = arith.addf %3, %5 : vector<128x192xf32>
    %7 = vector.extract_strided_slice %6 {offsets = [0, 0], sizes = [128, 128], strides = [1, 1]} : vector<128x192xf32> to vector<128x128xf32>
    %8 = vector.extract_strided_slice %6 {offsets = [0, 128], sizes = [128, 64], strides = [1, 1]} : vector<128x192xf32> to vector<128x64xf32>
    %cst_6 = arith.constant 0.000000e+00 : f32
    %9 = vector.broadcast %cst_6 : f32 to vector<128x64xf32>
    %10 = arith.maximumf %8, %9 : vector<128x64xf32>
    %cst_7 = arith.constant 0.000000e+00 : bf16
    %11 = vector.broadcast %cst_7 : bf16 to vector<2x1x10x64xbf16>
    %cst_8 = arith.constant 0.000000e+00 : bf16
    %12 = vector.broadcast %cst_8 : bf16 to vector<2x8x1x64xbf16>
    %c0_9 = arith.constant 0 : index
    %c0_10 = arith.constant 0 : index
    %c0_11 = arith.constant 0 : index
    %c0_12 = arith.constant 0 : index
    %13 = vector.load %arg11[%c0_9, %c0_10, %c0_11, %c0_12] : memref<2x10x10x64xbf16, #tpu.memory_space<vmem>>, vector<2x1x10x64xbf16>
    tpu.vector_store %arg11[%c0_9, %c0_10, %c0_11, %c0_12], %11 {strides = array<i32>} : memref<2x10x10x64xbf16, #tpu.memory_space<vmem>>, vector<2x1x10x64xbf16>,
    %c0_13 = arith.constant 0 : index
    %c9 = arith.constant 9 : index
    %c0_14 = arith.constant 0 : index
    %c0_15 = arith.constant 0 : index
    %14 = vector.load %arg11[%c0_13, %c9, %c0_14, %c0_15] : memref<2x10x10x64xbf16, #tpu.memory_space<vmem>>, vector<2x1x10x64xbf16>
    tpu.vector_store %arg11[%c0_13, %c9, %c0_14, %c0_15], %11 {strides = array<i32>} : memref<2x10x10x64xbf16, #tpu.memory_space<vmem>>, vector<2x1x10x64xbf16>,
    %c0_16 = arith.constant 0 : index
    %c1 = arith.constant 1 : index
    %c0_17 = arith.constant 0 : index
    %c0_18 = arith.constant 0 : index
    %15 = vector.load %arg11[%c0_16, %c1, %c0_17, %c0_18] : memref<2x10x10x64xbf16, #tpu.memory_space<vmem>>, vector<2x8x1x64xbf16>
    tpu.vector_store %arg11[%c0_16, %c1, %c0_17, %c0_18], %12 {strides = array<i32>} : memref<2x10x10x64xbf16, #tpu.memory_space<vmem>>, vector<2x8x1x64xbf16>,
    %c0_19 = arith.constant 0 : index
    %c1_20 = arith.constant 1 : index
    %c9_21 = arith.constant 9 : index
    %c0_22 = arith.constant 0 : index
    %16 = vector.load %arg11[%c0_19, %c1_20, %c9_21, %c0_22] : memref<2x10x10x64xbf16, #tpu.memory_space<vmem>>, vector<2x8x1x64xbf16>
    tpu.vector_store %arg11[%c0_19, %c1_20, %c9_21, %c0_22], %12 {strides = array<i32>} : memref<2x10x10x64xbf16, #tpu.memory_space<vmem>>, vector<2x8x1x64xbf16>,
    %17 = vector.shape_cast %10 : vector<128x64xf32> to vector<2x8x8x64xf32>
    %18 = arith.truncf %17 : vector<2x8x8x64xf32> to vector<2x8x8x64xbf16>
    %c0_23 = arith.constant 0 : index
    %c1_24 = arith.constant 1 : index
    %c1_25 = arith.constant 1 : index
    %c0_26 = arith.constant 0 : index
    %19 = vector.load %arg11[%c0_23, %c1_24, %c1_25, %c0_26] : memref<2x10x10x64xbf16, #tpu.memory_space<vmem>>, vector<2x8x8x64xbf16>
    tpu.vector_store %arg11[%c0_23, %c1_24, %c1_25, %c0_26], %18 {strides = array<i32>} : memref<2x10x10x64xbf16, #tpu.memory_space<vmem>>, vector<2x8x8x64xbf16>,
    %c0_27 = arith.constant 0 : index
    %c0_28 = arith.constant 0 : index
    %c0_29 = arith.constant 0 : index
    %c0_30 = arith.constant 0 : index
    %20 = vector.load %arg11[%c0_27, %c0_28, %c0_29, %c0_30] : memref<2x10x10x64xbf16, #tpu.memory_space<vmem>>, vector<2x10x10x64xbf16>
    %cst_31 = arith.constant 0.000000e+00 : f32
    %21 = vector.broadcast %cst_31 : f32 to vector<128x64xf32>
    %22 = vector.extract_strided_slice %20 {offsets = [0, 0, 0, 0], sizes = [2, 8, 8, 64], strides = [1, 1, 1, 1]} : vector<2x10x10x64xbf16> to vector<2x8x8x64xbf16>
    %23 = vector.shape_cast %22 : vector<2x8x8x64xbf16> to vector<128x64xbf16>
    %c0_32 = arith.constant 0 : index
    %c0_33 = arith.constant 0 : index
    %c0_34 = arith.constant 0 : index
    %24 = vector.load %arg4[%c0_32, %c0_33, %c0_34] : memref<9x64x64xbf16, #tpu.memory_space<vmem>>, vector<1x64x64xbf16>
    %25 = vector.shape_cast %24 : vector<1x64x64xbf16> to vector<64x64xbf16>
    %cst_35 = arith.constant dense<0.000000e+00> : vector<128x64xf32>
    %26 = tpu.matmul %23, %25, %cst_35 {dimension_numbers = #tpu.dot_dimension_numbers<[1], [0], [0], [1], [0, 0, 1, 1], [], []>} : vector<128x64xbf16>, vector<64x64xbf16>, vector<128x64xf32> -> vector<128x64xf32>
    %27 = arith.addf %21, %26 : vector<128x64xf32>
    %28 = vector.extract_strided_slice %20 {offsets = [0, 0, 1, 0], sizes = [2, 8, 8, 64], strides = [1, 1, 1, 1]} : vector<2x10x10x64xbf16> to vector<2x8x8x64xbf16>
    %29 = vector.shape_cast %28 : vector<2x8x8x64xbf16> to vector<128x64xbf16>
    %c1_36 = arith.constant 1 : index
    %c0_37 = arith.constant 0 : index
    %c0_38 = arith.constant 0 : index
    %30 = vector.load %arg4[%c1_36, %c0_37, %c0_38] : memref<9x64x64xbf16, #tpu.memory_space<vmem>>, vector<1x64x64xbf16>
    %31 = vector.shape_cast %30 : vector<1x64x64xbf16> to vector<64x64xbf16>
    %cst_39 = arith.constant dense<0.000000e+00> : vector<128x64xf32>
    %32 = tpu.matmul %29, %31, %cst_39 {dimension_numbers = #tpu.dot_dimension_numbers<[1], [0], [0], [1], [0, 0, 1, 1], [], []>} : vector<128x64xbf16>, vector<64x64xbf16>, vector<128x64xf32> -> vector<128x64xf32>
    %33 = arith.addf %27, %32 : vector<128x64xf32>
    %34 = vector.extract_strided_slice %20 {offsets = [0, 0, 2, 0], sizes = [2, 8, 8, 64], strides = [1, 1, 1, 1]} : vector<2x10x10x64xbf16> to vector<2x8x8x64xbf16>
    %35 = vector.shape_cast %34 : vector<2x8x8x64xbf16> to vector<128x64xbf16>
    %c2 = arith.constant 2 : index
    %c0_40 = arith.constant 0 : index
    %c0_41 = arith.constant 0 : index
    %36 = vector.load %arg4[%c2, %c0_40, %c0_41] : memref<9x64x64xbf16, #tpu.memory_space<vmem>>, vector<1x64x64xbf16>
    %37 = vector.shape_cast %36 : vector<1x64x64xbf16> to vector<64x64xbf16>
    %cst_42 = arith.constant dense<0.000000e+00> : vector<128x64xf32>
    %38 = tpu.matmul %35, %37, %cst_42 {dimension_numbers = #tpu.dot_dimension_numbers<[1], [0], [0], [1], [0, 0, 1, 1], [], []>} : vector<128x64xbf16>, vector<64x64xbf16>, vector<128x64xf32> -> vector<128x64xf32>
    %39 = arith.addf %33, %38 : vector<128x64xf32>
    %40 = vector.extract_strided_slice %20 {offsets = [0, 1, 0, 0], sizes = [2, 8, 8, 64], strides = [1, 1, 1, 1]} : vector<2x10x10x64xbf16> to vector<2x8x8x64xbf16>
    %41 = vector.shape_cast %40 : vector<2x8x8x64xbf16> to vector<128x64xbf16>
    %c3 = arith.constant 3 : index
    %c0_43 = arith.constant 0 : index
    %c0_44 = arith.constant 0 : index
    %42 = vector.load %arg4[%c3, %c0_43, %c0_44] : memref<9x64x64xbf16, #tpu.memory_space<vmem>>, vector<1x64x64xbf16>
    %43 = vector.shape_cast %42 : vector<1x64x64xbf16> to vector<64x64xbf16>
    %cst_45 = arith.constant dense<0.000000e+00> : vector<128x64xf32>
    %44 = tpu.matmul %41, %43, %cst_45 {dimension_numbers = #tpu.dot_dimension_numbers<[1], [0], [0], [1], [0, 0, 1, 1], [], []>} : vector<128x64xbf16>, vector<64x64xbf16>, vector<128x64xf32> -> vector<128x64xf32>
    %45 = arith.addf %39, %44 : vector<128x64xf32>
    %46 = vector.extract_strided_slice %20 {offsets = [0, 1, 1, 0], sizes = [2, 8, 8, 64], strides = [1, 1, 1, 1]} : vector<2x10x10x64xbf16> to vector<2x8x8x64xbf16>
    %47 = vector.shape_cast %46 : vector<2x8x8x64xbf16> to vector<128x64xbf16>
    %c4 = arith.constant 4 : index
    %c0_46 = arith.constant 0 : index
    %c0_47 = arith.constant 0 : index
    %48 = vector.load %arg4[%c4, %c0_46, %c0_47] : memref<9x64x64xbf16, #tpu.memory_space<vmem>>, vector<1x64x64xbf16>
    %49 = vector.shape_cast %48 : vector<1x64x64xbf16> to vector<64x64xbf16>
    %cst_48 = arith.constant dense<0.000000e+00> : vector<128x64xf32>
    %50 = tpu.matmul %47, %49, %cst_48 {dimension_numbers = #tpu.dot_dimension_numbers<[1], [0], [0], [1], [0, 0, 1, 1], [], []>} : vector<128x64xbf16>, vector<64x64xbf16>, vector<128x64xf32> -> vector<128x64xf32>
    %51 = arith.addf %45, %50 : vector<128x64xf32>
    %52 = vector.extract_strided_slice %20 {offsets = [0, 1, 2, 0], sizes = [2, 8, 8, 64], strides = [1, 1, 1, 1]} : vector<2x10x10x64xbf16> to vector<2x8x8x64xbf16>
    %53 = vector.shape_cast %52 : vector<2x8x8x64xbf16> to vector<128x64xbf16>
    %c5 = arith.constant 5 : index
    %c0_49 = arith.constant 0 : index
    %c0_50 = arith.constant 0 : index
    %54 = vector.load %arg4[%c5, %c0_49, %c0_50] : memref<9x64x64xbf16, #tpu.memory_space<vmem>>, vector<1x64x64xbf16>
    %55 = vector.shape_cast %54 : vector<1x64x64xbf16> to vector<64x64xbf16>
    %cst_51 = arith.constant dense<0.000000e+00> : vector<128x64xf32>
    %56 = tpu.matmul %53, %55, %cst_51 {dimension_numbers = #tpu.dot_dimension_numbers<[1], [0], [0], [1], [0, 0, 1, 1], [], []>} : vector<128x64xbf16>, vector<64x64xbf16>, vector<128x64xf32> -> vector<128x64xf32>
    %57 = arith.addf %51, %56 : vector<128x64xf32>
    %58 = vector.extract_strided_slice %20 {offsets = [0, 2, 0, 0], sizes = [2, 8, 8, 64], strides = [1, 1, 1, 1]} : vector<2x10x10x64xbf16> to vector<2x8x8x64xbf16>
    %59 = vector.shape_cast %58 : vector<2x8x8x64xbf16> to vector<128x64xbf16>
    %c6 = arith.constant 6 : index
    %c0_52 = arith.constant 0 : index
    %c0_53 = arith.constant 0 : index
    %60 = vector.load %arg4[%c6, %c0_52, %c0_53] : memref<9x64x64xbf16, #tpu.memory_space<vmem>>, vector<1x64x64xbf16>
    %61 = vector.shape_cast %60 : vector<1x64x64xbf16> to vector<64x64xbf16>
    %cst_54 = arith.constant dense<0.000000e+00> : vector<128x64xf32>
    %62 = tpu.matmul %59, %61, %cst_54 {dimension_numbers = #tpu.dot_dimension_numbers<[1], [0], [0], [1], [0, 0, 1, 1], [], []>} : vector<128x64xbf16>, vector<64x64xbf16>, vector<128x64xf32> -> vector<128x64xf32>
    %63 = arith.addf %57, %62 : vector<128x64xf32>
    %64 = vector.extract_strided_slice %20 {offsets = [0, 2, 1, 0], sizes = [2, 8, 8, 64], strides = [1, 1, 1, 1]} : vector<2x10x10x64xbf16> to vector<2x8x8x64xbf16>
    %65 = vector.shape_cast %64 : vector<2x8x8x64xbf16> to vector<128x64xbf16>
    %c7 = arith.constant 7 : index
    %c0_55 = arith.constant 0 : index
    %c0_56 = arith.constant 0 : index
    %66 = vector.load %arg4[%c7, %c0_55, %c0_56] : memref<9x64x64xbf16, #tpu.memory_space<vmem>>, vector<1x64x64xbf16>
    %67 = vector.shape_cast %66 : vector<1x64x64xbf16> to vector<64x64xbf16>
    %cst_57 = arith.constant dense<0.000000e+00> : vector<128x64xf32>
    %68 = tpu.matmul %65, %67, %cst_57 {dimension_numbers = #tpu.dot_dimension_numbers<[1], [0], [0], [1], [0, 0, 1, 1], [], []>} : vector<128x64xbf16>, vector<64x64xbf16>, vector<128x64xf32> -> vector<128x64xf32>
    %69 = arith.addf %63, %68 : vector<128x64xf32>
    %70 = vector.extract_strided_slice %20 {offsets = [0, 2, 2, 0], sizes = [2, 8, 8, 64], strides = [1, 1, 1, 1]} : vector<2x10x10x64xbf16> to vector<2x8x8x64xbf16>
    %71 = vector.shape_cast %70 : vector<2x8x8x64xbf16> to vector<128x64xbf16>
    %c8 = arith.constant 8 : index
    %c0_58 = arith.constant 0 : index
    %c0_59 = arith.constant 0 : index
    %72 = vector.load %arg4[%c8, %c0_58, %c0_59] : memref<9x64x64xbf16, #tpu.memory_space<vmem>>, vector<1x64x64xbf16>
    %73 = vector.shape_cast %72 : vector<1x64x64xbf16> to vector<64x64xbf16>
    %cst_60 = arith.constant dense<0.000000e+00> : vector<128x64xf32>
    %74 = tpu.matmul %71, %73, %cst_60 {dimension_numbers = #tpu.dot_dimension_numbers<[1], [0], [0], [1], [0, 0, 1, 1], [], []>} : vector<128x64xbf16>, vector<64x64xbf16>, vector<128x64xf32> -> vector<128x64xf32>
    %75 = arith.addf %69, %74 : vector<128x64xf32>
    %c0_61 = arith.constant 0 : index
    %c0_62 = arith.constant 0 : index
    %76 = vector.load %arg5[%c0_61, %c0_62] : memref<1x64xf32, #tpu.memory_space<vmem>>, vector<1x64xf32>
    %77 = vector.broadcast %76 : vector<1x64xf32> to vector<128x64xf32>
    %78 = arith.addf %75, %77 : vector<128x64xf32>
    %cst_63 = arith.constant 0.000000e+00 : f32
    %79 = vector.broadcast %cst_63 : f32 to vector<128x64xf32>
    %80 = arith.maximumf %78, %79 : vector<128x64xf32>
    %81 = arith.truncf %80 : vector<128x64xf32> to vector<128x64xbf16>
    %c0_64 = arith.constant 0 : index
    %c0_65 = arith.constant 0 : index
    %82 = vector.load %arg6[%c0_64, %c0_65] : memref<64x128xbf16, #tpu.memory_space<vmem>>, vector<64x128xbf16>
    %cst_66 = arith.constant dense<0.000000e+00> : vector<128x128xf32>
    %83 = tpu.matmul %81, %82, %cst_66 {dimension_numbers = #tpu.dot_dimension_numbers<[1], [0], [0], [1], [0, 0, 1, 1], [], []>} : vector<128x64xbf16>, vector<64x128xbf16>, vector<128x128xf32> -> vector<128x128xf32>
    %c0_67 = arith.constant 0 : index
    %c0_68 = arith.constant 0 : index
    %84 = vector.load %arg7[%c0_67, %c0_68] : memref<1x128xf32, #tpu.memory_space<vmem>>, vector<1x128xf32>
    %85 = vector.broadcast %84 : vector<1x128xf32> to vector<128x128xf32>
    %86 = arith.addf %83, %85 : vector<128x128xf32>
    %87 = vector.shape_cast %86 : vector<128x128xf32> to vector<2x64x128xf32>
    %cst_69 = arith.constant dense<0.000000e+00> : vector<2x128xf32>
    %88 = vector.multi_reduction <add>, %87, %cst_69 [1] : vector<2x64x128xf32> to vector<2x128xf32>
    %cst_70 = arith.constant 6.400000e+01 : f32
    %89 = vector.broadcast %cst_70 : f32 to vector<2x128xf32>
    %90 = arith.divf %88, %89 : vector<2x128xf32>
    %c0_71 = arith.constant 0 : index
    %c0_72 = arith.constant 0 : index
    %91 = vector.load %arg8[%c0_71, %c0_72] : memref<128x8xf32, #tpu.memory_space<vmem>>, vector<128x8xf32>
    %cst_73 = arith.constant dense<0.000000e+00> : vector<2x8xf32>
    %92 = tpu.matmul %90, %91, %cst_73 {dimension_numbers = #tpu.dot_dimension_numbers<[1], [0], [0], [1], [0, 0, 1, 1], [], []>} : vector<2x128xf32>, vector<128x8xf32>, vector<2x8xf32> -> vector<2x8xf32>
    %cst_74 = arith.constant 0.000000e+00 : f32
    %93 = vector.broadcast %cst_74 : f32 to vector<2x8xf32>
    %94 = arith.maximumf %92, %93 : vector<2x8xf32>
    %c0_75 = arith.constant 0 : index
    %c0_76 = arith.constant 0 : index
    %95 = vector.load %arg9[%c0_75, %c0_76] : memref<8x128xf32, #tpu.memory_space<vmem>>, vector<8x128xf32>
    %cst_77 = arith.constant dense<0.000000e+00> : vector<2x128xf32>
    %96 = tpu.matmul %94, %95, %cst_77 {dimension_numbers = #tpu.dot_dimension_numbers<[1], [0], [0], [1], [0, 0, 1, 1], [], []>} : vector<2x8xf32>, vector<8x128xf32>, vector<2x128xf32> -> vector<2x128xf32>
    %97 = arith.negf %96 : vector<2x128xf32>
    %98 = math.exp %97 : vector<2x128xf32>
    %cst_78 = arith.constant 1.000000e+00 : f32
    %99 = vector.broadcast %cst_78 : f32 to vector<2x128xf32>
    %100 = arith.addf %99, %98 : vector<2x128xf32>
    %101 = arith.divf %99, %100 : vector<2x128xf32>
    %102 = vector.shape_cast %101 : vector<2x128xf32> to vector<2x1x128xf32>
    %103 = vector.broadcast %102 : vector<2x1x128xf32> to vector<2x64x128xf32>
    %104 = arith.mulf %87, %103 : vector<2x64x128xf32>
    %105 = vector.shape_cast %7 : vector<128x128xf32> to vector<2x64x128xf32>
    %106 = arith.addf %104, %105 : vector<2x64x128xf32>
    %cst_79 = arith.constant 0.000000e+00 : f32
    %107 = vector.broadcast %cst_79 : f32 to vector<2x64x128xf32>
    %108 = arith.maximumf %106, %107 : vector<2x64x128xf32>
    %c0_80 = arith.constant 0 : index
    %c0_81 = arith.constant 0 : index
    %c0_82 = arith.constant 0 : index
    %109 = vector.load %arg10[%c0_80, %c0_81, %c0_82] : memref<2x64x128xf32, #tpu.memory_space<vmem>>, vector<2x64x128xf32>
    tpu.vector_store %arg10[%c0_80, %c0_81, %c0_82], %108 {strides = array<i32>} : memref<2x64x128xf32, #tpu.memory_space<vmem>>, vector<2x64x128xf32>,
    return
  }
  func.func @transform_0(%arg0: i32) -> (i32, i32, i32) {
    %c0_i32 = arith.constant 0 : i32
    %c0_i32_0 = arith.constant 0 : i32
    %c0_i32_1 = arith.constant 0 : i32
    return %arg0, %c0_i32, %c0_i32_0 : i32, i32, i32
  }
  func.func @transform_1(%arg0: i32) -> (i32, i32) {
    %c0_i32 = arith.constant 0 : i32
    %c0_i32_0 = arith.constant 0 : i32
    %c0_i32_1 = arith.constant 0 : i32
    return %c0_i32, %c0_i32_0 : i32, i32
  }
  func.func @transform_2(%arg0: i32) -> (i32, i32) {
    %c0_i32 = arith.constant 0 : i32
    %c0_i32_0 = arith.constant 0 : i32
    %c0_i32_1 = arith.constant 0 : i32
    return %c0_i32, %c0_i32_0 : i32, i32
  }
  func.func @transform_3(%arg0: i32) -> (i32, i32, i32) {
    %c0_i32 = arith.constant 0 : i32
    %c0_i32_0 = arith.constant 0 : i32
    %c0_i32_1 = arith.constant 0 : i32
    %c0_i32_2 = arith.constant 0 : i32
    return %c0_i32, %c0_i32_0, %c0_i32_1 : i32, i32, i32
  }
  func.func @transform_4(%arg0: i32) -> (i32, i32) {
    %c0_i32 = arith.constant 0 : i32
    %c0_i32_0 = arith.constant 0 : i32
    %c0_i32_1 = arith.constant 0 : i32
    return %c0_i32, %c0_i32_0 : i32, i32
  }
  func.func @transform_5(%arg0: i32) -> (i32, i32) {
    %c0_i32 = arith.constant 0 : i32
    %c0_i32_0 = arith.constant 0 : i32
    %c0_i32_1 = arith.constant 0 : i32
    return %c0_i32, %c0_i32_0 : i32, i32
  }
  func.func @transform_6(%arg0: i32) -> (i32, i32) {
    %c0_i32 = arith.constant 0 : i32
    %c0_i32_0 = arith.constant 0 : i32
    %c0_i32_1 = arith.constant 0 : i32
    return %c0_i32, %c0_i32_0 : i32, i32
  }
  func.func @transform_7(%arg0: i32) -> (i32, i32) {
    %c0_i32 = arith.constant 0 : i32
    %c0_i32_0 = arith.constant 0 : i32
    %c0_i32_1 = arith.constant 0 : i32
    return %c0_i32, %c0_i32_0 : i32, i32
  }
  func.func @transform_8(%arg0: i32) -> (i32, i32) {
    %c0_i32 = arith.constant 0 : i32
    %c0_i32_0 = arith.constant 0 : i32
    %c0_i32_1 = arith.constant 0 : i32
    return %c0_i32, %c0_i32_0 : i32, i32
  }
  func.func @transform_9(%arg0: i32) -> (i32, i32, i32) {
    %c0_i32 = arith.constant 0 : i32
    %c0_i32_0 = arith.constant 0 : i32
    %c0_i32_1 = arith.constant 0 : i32
    return %arg0, %c0_i32, %c0_i32_0 : i32, i32, i32
  }
}

</mosaic_0001>

<bundles_post_ra>
// kernel: bottleneck_forward.1
= control target key start
LH: loop header
LB: loop body
LE: loop exit
PB: predicated region body
PF: predicated region fallthrough
CT: control target
= control target key end

     0   :  { %14 = vsyncpa [#allocation4], 0  ;;  %s4519_s0 = inlined_call_operand.vmem [shape: bf16[2,64,64], index: 0, kind: input, shape index: {}]   ;;  %s4520_s1 = inlined_call_operand.hbm [shape: bf16[64,192], index: 1, kind: input, shape index: {}]   ;;  %s4521_s2 = inlined_call_operand.hbm [shape: f32[1,192], index: 2, kind: input, shape index: {}]   ;;  %s4522_s3 = inlined_call_operand.vmem [shape: bf16[9,64,64], index: 3, kind: input, shape index: {}]   ;;  %s4523_s4 = inlined_call_operand.hbm [shape: f32[1,64], index: 4, kind: input, shape index: {}]   ;;  %s4524_s5 = inlined_call_operand.vmem [shape: bf16[64,128], index: 5, kind: input, shape index: {}]   ;;  %s4525_s6 = inlined_call_operand.hbm [shape: f32[1,128], index: 6, kind: input, shape index: {}]   ;;  %s4526_s7 = inlined_call_operand.vmem [shape: f32[128,8], index: 7, kind: input, shape index: {}]   ;;  %s4527_s8 = inlined_call_operand.hbm [shape: f32[8,128], index: 8, kind: input, shape index: {}]   ;;  %s4528_s9 = inlined_call_operand.hbm [shape: f32[2,64,128], index: 9, kind: output, shape index: {}]  }
   0x1   :  { %15 = vsyncpa [#allocation7], 0 }
   0x2   :  { %16 = vsyncpa [#allocation10], 0  ;;  %s38_s11 = sshll.u32 %s4521_s2, 4  ;;  %s39_s11 = int_to_ptr.hbm [resolvable:$true] %s38_s11 }
   0x3   :  { %17 = vsyncpa [#allocation5], 0  ;;  %s3308_s12 = smov [#allocation6]   ;;  %s64_s16 = sshll.u32 %s4525_s6, 4  ;;  %s65_s16 = int_to_ptr.hbm [resolvable:$true] %s64_s16 }
   0x4   :  { %s40_s13 = sshll.u32 %s3308_s12, 4  ;;  %s3309_s17 = smov [#allocation9]   ;;  %s41_s13 = int_to_ptr.vmem [resolvable:$true] %s40_s13 }
   0x5   :  { %43 = dma.hbm_to_vmem [thread:$0]  %s39_s11, 32, %s41_s13, [#allocation7]  }
   0x6   :  { %s66_s18 = sshll.u32 %s3309_s17, 4  ;;  %s24_s21 = sshll.u32 %s4520_s1, 4  ;;  %s67_s18 = int_to_ptr.vmem [resolvable:$true] %s66_s18  ;;  %s25_s21 = int_to_ptr.hbm [resolvable:$true] %s24_s21 }
   0x7   :  { %69 = dma.hbm_to_vmem [thread:$0]  %s65_s16, 16, %s67_s18, [#allocation10]  }
   0x8   :  { %s3310_s2 = smov [#allocation3]   ;;  %s51_s25 = sshll.u32 %s4523_s4, 4  ;;  %s52_s25 = int_to_ptr.hbm [resolvable:$true] %s51_s25 }
   0x9   :  { %s26_s22 = sshll.u32 %s3310_s2, 4  ;;  %s3311_s26 = smov 128   ;;  %s27_s22 = int_to_ptr.vmem [resolvable:$true] %s26_s22 }
   0xa   :  { %s3312_s6 = smov 8   ;;  %s3313_s27 = smov [#allocation8]  }
   0xb   :  { %32 = dma.hbm_to_vmem [thread:$0]  %s25_s21, 1024, %s27_s22, [#allocation4], %s3311_s26, %s3311_s26, %s3312_s6  }
   0xc   :  { %s53_s28 = sshll.u32 %s3313_s27, 4  ;;  %s77_s30 = sshll.u32 %s4527_s8, 4  ;;  %s54_s28 = int_to_ptr.vmem [resolvable:$true] %s53_s28  ;;  %s78_s30 = int_to_ptr.hbm [resolvable:$true] %s77_s30 }
   0xd   :  { %56 = dma.hbm_to_vmem [thread:$0]  %s52_s25, 16, %s54_s28, [#allocation7]  }
   0xe   :  { %s3314_s10 = smov [#allocation11]  }
   0xf   :  { %s79_s11 = sshll.u32 %s3314_s10, 4  ;;  %s80_s11 = int_to_ptr.vmem [resolvable:$true] %s79_s11 }
  0x10   :  { %82 = dma.hbm_to_vmem [thread:$0]  %s78_s30, 128, %s80_s11, [#allocation10]  }
  0x11   :  { %3300 = dma.done.wait [#allocation4], 1024  }
  0x12   :  { %3301 = vsyncadd [#allocation4], 4294966272 }
  0x13   :  { %3302 = dma.done.wait [#allocation7], 48  }
  0x14   :  { %3303 = vsyncadd [#allocation7], 4294967248 }
  0x15   :  { %3304 = dma.done.wait [#allocation10], 144  }
  0x16   :  { %3305 = vsyncadd [#allocation10], 4294967152  ;;  %v3096_v0 = vld [vmem:[#allocation3 + $0x34] sm:$0xf]  ;;  %v2736_v1 = vld [vmem:[#allocation3 + $0x38] sm:$0xf0] }
  0x17   :  { %v3094_v2 = vld [vmem:[#allocation3 + $0x24] sm:$0xf]  ;;  %v2739_v3 = vor.u32 %v3096_v0, %v2736_v1  ;;  %v2728_v4 = vld [vmem:[#allocation3 + $0x28] sm:$0xf0]  ;;  %v2734_v6 = vld [vmem:[#allocation3 + $0x30] sm:$0xf] }
  0x18   :  { %v2731_v5 = vor.u32 %v3094_v2, %v2728_v4  ;;  %v3097_v7 = vld [vmem:[#allocation3 + $0x34] sm:$0xf0]  ;;  %v2726_v8 = vld [vmem:[#allocation3 + $0x20] sm:$0xf]  ;;  %v3092_v9 = vld [vmem:[#allocation3 + $0x14] sm:$0xf] }
  0x19   :  { %292 = vmatpush.bf16.msra.mxu1 %v2739_v3  ;;  %v2720_v10 = vld [vmem:[#allocation3 + $0x18] sm:$0xf0]  ;;  %v2735_v11 = vor.u32 %v3097_v7, %v2734_v6  ;;  %v3095_v12 = vld [vmem:[#allocation3 + $0x24] sm:$0xf0]  ;;  %v2718_v15 = vld [vmem:[#allocation3 + $0x10] sm:$0xf] }
  0x1a   :  { %v2727_v13 = vor.u32 %v3095_v12, %v2726_v8  ;;  %v2723_v14 = vor.u32 %v3092_v9, %v2720_v10  ;;  %v3093_v16 = vld [vmem:[#allocation3 + $0x14] sm:$0xf0]  ;;  %v3090_v17 = vld [vmem:[#allocation3 + $0x4] sm:$0xf]  ;;  %v2712_v18 = vld [vmem:[#allocation3 + $0x8] sm:$0xf0] }
  0x1b   :  { %243 = vmatpush.bf16.msra.mxu0 %v2735_v11  ;;  %v2719_v19 = vor.u32 %v3093_v16, %v2718_v15  ;;  %v2715_v20 = vor.u32 %v3090_v17, %v2712_v18  ;;  %v2710_v21 = vld [vmem:[#allocation3] sm:$0xf]  ;;  %v3091_v22 = vld [vmem:[#allocation3 + $0x4] sm:$0xf0]  ;;  %vm214_vm0 = vcmask 523264   ;;  %v3084_v26 = vld [vmem:[%s4519_s0 + $0x10] sm:$0xff] }
  0x1c   :  { %v3082_v23 = vld [vmem:[%s4519_s0] sm:$0xff]  ;;  %v2711_v24 = vor.u32 %v3091_v22, %v2710_v21  ;;  %v3083_v25 = vld [vmem:[%s4519_s0 + $0x8] sm:$0xff]  ;;  %v3085_v27 = vld [vmem:[%s4519_s0 + $0x18] sm:$0xff]  ;;  %vm355_vm1 = vcmask 516096   ;;  %vm366_vm2 = vsmask.f32 256 }
  0x1d   :  { %293 = vmatpush.bf16.msra.mxu1 %v2731_v5  ;;  %v3086_v28 = vld [vmem:[%s4519_s0 + $0x20] sm:$0xff]  ;;  %v3087_v29 = vld [vmem:[%s4519_s0 + $0x28] sm:$0xff]  ;;  %v3088_v30 = vld [vmem:[%s4519_s0 + $0x30] sm:$0xff]  ;;  %vm416_vm3 = vsmask.f32 7938  ;;  %vm353_vm6 = vcmask 519168  }
  0x1e   :  { %vm3421_vm4 = vmand %vm355_vm1, %vm366_vm2  ;;  %v368_v32 = vld [vmem:[#allocation2 + $0x8] sm:$0x1]  ;;  %v418_v33 = vld [vmem:[#allocation2 + $0xc] sm:$0x1]  ;;  %v3315_v45 = vmov 0   ;;  %vm1298_vm8 = vcmask 1042432  }
  0x1f   :  { %244 = vmatpush.bf16.msra.mxu0 %v2727_v13  ;;  %v369_v34 = vsel %vm3421_vm4, 0, %v368_v32  ;;  %vm3429_vm5 = vmand %vm355_vm1, %vm416_vm3  ;;  %v3101_v37 = vld [vmem:[%s4522_s3 + $0x18] sm:$0xff]  ;;  %v371_v38 = vld [vmem:[#allocation2 + $0x10] sm:$0x1]  ;;  %354 = vst.msk [vmem:[#allocation2] sm:$0xf] %vm353_vm6, %v3315_v45 }
  0x20   :  { %370 = vst [vmem:[#allocation2 + $0x8] sm:$0x1] %v369_v34  ;;  %v419_v36 = vsel %vm3429_vm5, 0, %v418_v33  ;;  %v421_v39 = vld [vmem:[#allocation2 + $0x14] sm:$0x1]  ;;  %1237 = vmatpush.bf16.msra.mxu3 %v3101_v37  ;;  %v372_v40 = vsel %vm3421_vm4, 0, %v371_v38  ;;  %vm3528_vm7 = vmand %vm353_vm6, %vm416_vm3 }
  0x21   :  { %294 = vmatpush.bf16.msra.mxu1 %v2723_v14  ;;  %420 = vst [vmem:[#allocation2 + $0xc] sm:$0x1] %v419_v36  ;;  %v422_v41 = vsel %vm3429_vm5, 0, %v421_v39  ;;  %v3109_v42 = vld [vmem:[%s4522_s3 + $0x58] sm:$0xff]  ;;  %v3100_v43 = vld [vmem:[%s4522_s3 + $0x10] sm:$0xff]  ;;  %v3099_v47 = vld [vmem:[%s4522_s3 + $0x8] sm:$0xff] }
  0x22   :  { %373 = vst [vmem:[#allocation2 + $0x10] sm:$0x1] %v372_v40  ;;  %v3089_v44 = vld [vmem:[%s4519_s0 + $0x38] sm:$0xff]  ;;  %v3108_v46 = vld [vmem:[%s4522_s3 + $0x50] sm:$0xff]  ;;  %v3107_v54 = vld [vmem:[%s4522_s3 + $0x48] sm:$0xff]  ;;  %vm1299_vm9 = vcmask 1046532  }
  0x23   :  { %245 = vmatpush.bf16.msra.mxu0 %v2719_v19  ;;  %423 = vst [vmem:[#allocation2 + $0x14] sm:$0x1] %v422_v41  ;;  %v3113_v48 = vld [vmem:[%s4522_s3 + $0x78] sm:$0xff]  ;;  %v3098_v55 = vld [vmem:[%s4522_s3] sm:$0xff]  ;;  %v3112_v56 = vld [vmem:[%s4522_s3 + $0x70] sm:$0xff]  ;;  %vm2517_vm15 = vcmask 1041409  }
  0x24   :  { %1238 = vmatpush.bf16.msra.mxu3 %v3100_v43  ;;  %356 = vst.msk [vmem:[#allocation2 + $0x4] sm:$0x1] %vm355_vm1, %v3315_v45  ;;  %v3105_v49 = vld [vmem:[%s4522_s3 + $0x38] sm:$0xff]  ;;  %v3104_v57 = vld [vmem:[%s4522_s3 + $0x30] sm:$0xff]  ;;  %v3106_v58 = vld [vmem:[%s4522_s3 + $0x40] sm:$0xff]  ;;  %s2661_s13 = sshll.u32 %s4528_s9, 4  ;;  %s2662_s13 = int_to_ptr.hbm [resolvable:$true] %s2661_s13 }
  0x25   :  { %295 = vmatpush.bf16.msra.mxu1 %v2715_v20  ;;  %357 = vst.msk [vmem:[#allocation2 + $0x50] sm:$0xf] %vm353_vm6, %v3315_v45  ;;  %v374_v50 = vld [vmem:[#allocation2 + $0x18] sm:$0x1]  ;;  %v424_v51 = vld [vmem:[#allocation2 + $0x1c] sm:$0x1]  ;;  %1100 = vmatpush.bf16.msra.mxu2 %v3105_v49  ;;  %vm3547_vm10 = vmor %vm1298_vm8, %vm1299_vm9 }
  0x26   :  { %358 = vst.msk [vmem:[#allocation2 + $0x54] sm:$0x1] %vm355_vm1, %v3315_v45  ;;  %v375_v52 = vsel %vm3421_vm4, 0, %v374_v50  ;;  %v425_v53 = vsel %vm3429_vm5, 0, %v424_v51  ;;  %v128_v59 = vld [vmem:[#allocation6] sm:$0x3] }
  0x27   :  { %246 = vmatpush.bf16.msra.mxu0 %v2711_v24  ;;  %360 = vst.msk [vmem:[#allocation2 + $0x48] sm:$0xf] %vm353_vm6, %v3315_v45  ;;  %v3111_v60 = vld [vmem:[%s4522_s3 + $0x68] sm:$0xff]  ;;  %v377_v62 = vld [vmem:[#allocation2 + $0x20] sm:$0x1]  ;;  %v3499_v0 = vperm.slane %v128_v59, 1 }
  0x28   :  { %2748 = vmatmul.msk.bf16.vlgmr.msra.gmra.mxu1 %vm214_vm0, %v3082_v23  ;;  %1239 = vmatpush.bf16.msra.mxu3 %v3099_v47  ;;  %376 = vst [vmem:[#allocation2 + $0x18] sm:$0x1] %v375_v52  ;;  %v3103_v61 = vld [vmem:[%s4522_s3 + $0x28] sm:$0xff]  ;;  %v427_v63 = vld [vmem:[#allocation2 + $0x24] sm:$0x1]  ;;  %v378_v1 = vsel %vm3421_vm4, 0, %v377_v62 }
  0x29   :  { %1584 = vmatpush.bf16.msrb.mxu1 %v3113_v48  ;;  %426 = vst [vmem:[#allocation2 + $0x1c] sm:$0x1] %v425_v53  ;;  %1101 = vmatpush.bf16.msra.mxu2 %v3104_v57  ;;  %v428_v2 = vsel %vm3429_vm5, 0, %v427_v63  ;;  %v3110_v3 = vld [vmem:[%s4522_s3 + $0x60] sm:$0xff]  ;;  %v380_v9 = vld [vmem:[#allocation2 + $0x28] sm:$0x1] }
  0x2a   :  { %2740 = vmatmul.msk.bf16.vlgmr.msra.gmra.mxu0 %vm214_vm0, %v3082_v23  ;;  %361 = vst.msk [vmem:[#allocation2 + $0x4c] sm:$0x1] %vm355_vm1, %v3315_v45  ;;  %v3102_v4 = vld [vmem:[%s4522_s3 + $0x20] sm:$0xff]  ;;  %v430_v10 = vld [vmem:[#allocation2 + $0x2c] sm:$0x1]  ;;  %v381_v13 = vsel %vm3421_vm4, 0, %v380_v9 }
  0x2b   :  { %1450 = vmatpush.bf16.msrb.mxu0 %v3109_v42  ;;  %362 = vst.msk [vmem:[#allocation2 + $0x98] sm:$0xf] %vm353_vm6, %v3315_v45  ;;  %v3512_v12 = vld [vmem:[#allocation2] sm:$0xf]  ;;  %v431_v14 = vsel %vm3429_vm5, 0, %v430_v10  ;;  %v3518_v16 = vperm.slane %v128_v59, 0 }
  0x2c   :  { %1240 = vmatpush.bf16.msra.mxu3 %v3098_v55  ;;  %363 = vst.msk [vmem:[#allocation2 + $0x9c] sm:$0x1] %vm355_vm1, %v3315_v45  ;;  %v792_v18 = vshrl.u32 %v3512_v12, 16  ;;  %v795_v19 = vshll.u32 %v3512_v12, 16  ;;  %v741_v32 = vld [vmem:[#allocation2 + $0x4] sm:$0x1] }
  0x2d   :  { %1585 = vmatpush.bf16.msrb.mxu1 %v3112_v56  ;;  %1102 = vmatpush.bf16.msra.mxu2 %v3103_v61  ;;  %379 = vst [vmem:[#allocation2 + $0x20] sm:$0x1] %v378_v1  ;;  %v383_v39 = vld [vmem:[#allocation2 + $0x30] sm:$0x1]  ;;  %v433_v40 = vld [vmem:[#allocation2 + $0x34] sm:$0x1]  ;;  %v1161_v56 = vunpack.c.l.b16 %v3512_v12 }
  0x2e   :  { %429 = vst [vmem:[#allocation2 + $0x24] sm:$0x1] %v428_v2  ;;  %v794_v33 = vrot.slane %v792_v18, 4  ;;  %v797_v34 = vrot.slane %v795_v19, 5  ;;  %v384_v41 = vsel %vm3421_vm4, 0, %v383_v39  ;;  %v434_v42 = vsel %vm3429_vm5, 0, %v433_v40 }
  0x2f   :  { %1451 = vmatpush.bf16.msrb.mxu0 %v3108_v46  ;;  %382 = vst [vmem:[#allocation2 + $0x28] sm:$0x1] %v381_v13  ;;  %v1303_v45 = vrot.slane %v741_v32, 5  ;;  %v3117_v46 = vld [vmem:[%s4522_s3 + $0x98] sm:$0xff]  ;;  %v801_v50 = vshll.u32 %v741_v32, 16 }
  0x30   :  { %4545 = vst [vmem:[#allocation17_spill] sm:$0xff] %v3518_v16  ;;  %v798_v49 = vor.u32 %v797_v34, %v794_v33  ;;  %v653_v55 = vld [vmem:[#allocation2 + $0x14] sm:$0x1]  ;;  %vm788_vm11 = vsmask.f32 3328 }
  0x31   :  { %1586 = vmatpush.bf16.msrb.mxu1 %v3111_v60  ;;  %1103 = vmatpush.bf16.msra.mxu2 %v3102_v4  ;;  %432 = vst [vmem:[#allocation2 + $0x2c] sm:$0x1] %v431_v14  ;;  %vm789_vm12 = vsmask.f32 7440  ;;  %v803_v63 = vrot.slane %v801_v50, 5 }
  0x32   :  { %385 = vst [vmem:[#allocation2 + $0x30] sm:$0x1] %v384_v41  ;;  %v799_v62 = vrot.slane %v798_v49, 4  ;;  %vm3561_vm13 = vmor %vm788_vm11, %vm789_vm12  ;;  %v659_v32 = vld [vmem:[#allocation2 + $0x1c] sm:$0x1] }
  0x33   :  { %1452 = vmatpush.bf16.msrb.mxu0 %v3107_v54  ;;  %435 = vst [vmem:[#allocation2 + $0x34] sm:$0x1] %v434_v42  ;;  %v650_v54 = vld [vmem:[#allocation2 + $0x10] sm:$0xf] }
  0x34   :  { %v804_v34 = vsel %vm3561_vm13, %v799_v62, %v803_v63 }
  0x35   :  { %1587 = vmatpush.bf16.msrb.mxu1 %v3110_v3  ;;  %1744 = vmatpush.bf16.msrb.mxu2 %v3117_v46 }
  0x37   :  { %1453 = vmatpush.bf16.msrb.mxu0 %v3106_v58 }
  0x38   :  { %2749 = vmatmul.msk.bf16.gmra.mxu1 %vm214_vm0, %v3083_v25 }
  0x3a   :  { %2741 = vmatmul.msk.bf16.gmra.mxu0 %vm214_vm0, %v3083_v25  ;;  %v644_v25 = vld [vmem:[#allocation2 + $0x8] sm:$0xf] }
  0x48   :  { %2750 = vmatmul.msk.bf16.gmra.mxu1 %vm214_vm0, %v3084_v26 }
  0x4a   :  { %2742 = vmatmul.msk.bf16.gmra.mxu0 %vm214_vm0, %v3084_v26  ;;  %v647_v26 = vld [vmem:[#allocation2 + $0xc] sm:$0x1] }
  0x58   :  { %2751 = vmatmul.msk.bf16.gmra.mxu1 %vm214_vm0, %v3085_v27 }
  0x5a   :  { %2743 = vmatmul.msk.bf16.gmra.mxu0 %vm214_vm0, %v3085_v27 }
  0x68   :  { %2752 = vmatmul.msk.bf16.gmra.mxu1 %vm214_vm0, %v3086_v28 }
  0x6a   :  { %2744 = vmatmul.msk.bf16.gmra.mxu0 %vm214_vm0, %v3086_v28 }
  0x78   :  { %2753 = vmatmul.msk.bf16.gmra.mxu1 %vm214_vm0, %v3087_v29 }
  0x7a   :  { %2745 = vmatmul.msk.bf16.gmra.mxu0 %vm214_vm0, %v3087_v29 }
  0x88   :  { %2754 = vmatmul.msk.bf16.gmra.mxu1 %vm214_vm0, %v3088_v30 }
  0x8a   :  { %2746 = vmatmul.msk.bf16.gmra.mxu0 %vm214_vm0, %v3088_v30 }
  0x98   :  { %2755 = vmatmul.msk.bf16.gmra.mxu1 %vm214_vm0, %v3089_v44 }
  0x9a   :  { %2747 = vmatmul.msk.bf16.gmra.mxu0 %vm214_vm0, %v3089_v44  ;;  %v2812_v44 = vrot.slane %v3512_v12, 9 }
  0x9c   :  { %v1304_v60 = vsel %vm3547_vm10, %v2812_v44, %v1303_v45 }
  0x9d   :  { %v1374_v10 = vunpack.c.l.b16 %v1304_v60 }
  0xa5   :  { %v297_v5 = vpop.f32.mrf.mxu1 }
  0xa6   :  { %v298_v6 = vadd.f32 %v297_v5, %v3499_v0  ;;  %v386_v5 = vld [vmem:[#allocation2 + $0x38] sm:$0x1] }
  0xa7   :  { %v248_v8 = vpop.f32.mrf.mxu0 }
  0xa8   :  { %v337_v7 = vmax.f32 %v298_v6, 0.0  ;;  %v3524_v23 = vadd.f32 %v248_v8, %v3518_v16  ;;  %v436_v6 = vld [vmem:[#allocation2 + $0x3c] sm:$0x1] }
  0xaa   :  { %v466_v11 = vpack.c.bf16 %v337_v7, %v337_v7  ;;  %4546 = vst [vmem:[#allocation18_spill] sm:$0xff] %v3524_v23 }
  0xac   :  { %v483_v15 = vshrl.u32 %v466_v11, 16  ;;  %v486_v21 = vshll.u32 %v466_v11, 16 }
  0xad   :  { %v299_v17 = vpop.f32.mrf.mxu1 }
  0xae   :  { %v485_v20 = vrot.slane %v483_v15, 7  ;;  %v300_v22 = vadd.f32 %v299_v17, %v3499_v0 }
  0xaf   :  { %v3532_v30 = vpop.f32.mrf.mxu0 }
  0xb0   :  { %v488_v27 = vor.u32 %v486_v21, %v485_v20  ;;  %v489_v28 = vrot.slane %v485_v20, 4  ;;  %v338_v29 = vmax.f32 %v300_v22, 0.0  ;;  %4549 = vst [vmem:[#allocation19_spill] sm:$0xff] %v3532_v30 }
  0xb2   :  { %v645_v36 = vsel %vm3528_vm7, %v488_v27, %v644_v25  ;;  %v648_v37 = vsel %vm3421_vm4, %v489_v28, %v647_v26  ;;  %v467_v38 = vpack.c.bf16 %v338_v29, %v338_v29  ;;  %v656_v29 = vld [vmem:[#allocation2 + $0x18] sm:$0xf] }
  0xb3   :  { %646 = vst [vmem:[#allocation2 + $0x8] sm:$0xf] %v645_v36  ;;  %v387_v36 = vsel %vm3421_vm4, 0, %v386_v5 }
  0xb4   :  { %649 = vst [vmem:[#allocation2 + $0xc] sm:$0x1] %v648_v37  ;;  %v491_v43 = vshrl.u32 %v467_v38, 16  ;;  %v494_v52 = vshll.u32 %v467_v38, 16  ;;  %v437_v37 = vsel %vm3429_vm5, 0, %v436_v6 }
  0xb5   :  { %v302_v47 = vpop.f32.mrf.mxu1  ;;  %388 = vst [vmem:[#allocation2 + $0x38] sm:$0x1] %v387_v36  ;;  %v439_v6 = vld [vmem:[#allocation2 + $0x44] sm:$0x1] }
  0xb6   :  { %v493_v51 = vrot.slane %v491_v43, 7  ;;  %v303_v53 = vadd.f32 %v302_v47, %v3499_v0  ;;  %438 = vst [vmem:[#allocation2 + $0x3c] sm:$0x1] %v437_v37 }
  0xb7   :  { %v253_v61 = vpop.f32.mrf.mxu0 }
  0xb8   :  { %v496_v57 = vor.u32 %v494_v52, %v493_v51  ;;  %v497_v58 = vrot.slane %v493_v51, 4  ;;  %v339_v59 = vmax.f32 %v303_v53, 0.0  ;;  %v3566_v22 = vadd.f32 %v253_v61, %v3518_v16 }
  0xb9   :  { %v1024_v52 = vunpack.c.l.b16 %v804_v34 }
  0xba   :  { %v651_v1 = vsel %vm3528_vm7, %v496_v57, %v650_v54  ;;  %v654_v2 = vsel %vm3421_vm4, %v497_v58, %v653_v55  ;;  %v468_v3 = vpack.c.bf16 %v339_v59, %v339_v59  ;;  %v742_v4 = vld [vmem:[#allocation2 + $0x8] sm:$0xf]  ;;  %4554 = vst [vmem:[#allocation20_spill] sm:$0xff] %v3566_v22 }
  0xbb   :  { %652 = vst [vmem:[#allocation2 + $0x10] sm:$0xf] %v651_v1  ;;  %v1162_v7 = vunpack.c.l.b16 %v742_v4  ;;  %v2813_v8 = vrot.slane %v742_v4, 9  ;;  %v743_v9 = vld [vmem:[#allocation2 + $0xc] sm:$0x1]  ;;  %v806_v11 = vshrl.u32 %v742_v4, 16 }
  0xbc   :  { %655 = vst [vmem:[#allocation2 + $0x14] sm:$0x1] %v654_v2  ;;  %v499_v12 = vshrl.u32 %v468_v3, 16  ;;  %v502_v13 = vshll.u32 %v468_v3, 16  ;;  %v1307_v14 = vrot.slane %v743_v9, 5  ;;  %v809_v17 = vshll.u32 %v742_v4, 16 }
  0xbd   :  { %v304_v18 = vpop.f32.mrf.mxu1  ;;  %v1177_v19 = vpack.c.b16 %v1162_v7, %v1161_v56  ;;  %v808_v20 = vrot.slane %v806_v11, 4  ;;  %v815_v21 = vshll.u32 %v743_v9, 16  ;;  %v389_v1 = vld [vmem:[#allocation2 + $0x40] sm:$0x1]  ;;  %v665_v9 = vld [vmem:[#allocation2 + $0x24] sm:$0x1] }
  0xbe   :  { %v501_v25 = vrot.slane %v499_v12, 7  ;;  %v305_v26 = vadd.f32 %v304_v18, %v3499_v0  ;;  %v1308_v27 = vsel %vm3547_vm10, %v2813_v8, %v1307_v14  ;;  %v811_v28 = vrot.slane %v809_v17, 5  ;;  %v662_v8 = vld [vmem:[#allocation2 + $0x20] sm:$0xf] }
  0xbf   :  { %2804 = vmatmul.msk.bf16.vlgmr.msra.gmra.mxu3 %vm214_vm0, %v1177_v19  ;;  %v1375_v33 = vunpack.c.l.b16 %v1308_v27  ;;  %v3578_v42 = vpop.f32.mrf.mxu0  ;;  %v817_v44 = vrot.slane %v815_v21, 5  ;;  %v390_v12 = vsel %vm3421_vm4, 0, %v389_v1  ;;  %v440_v21 = vsel %vm3429_vm5, 0, %v439_v6 }
  0xc0   :  { %v504_v38 = vor.u32 %v502_v13, %v501_v25  ;;  %v505_v39 = vrot.slane %v501_v25, 4  ;;  %v340_v40 = vmax.f32 %v305_v26, 0.0  ;;  %v812_v41 = vor.u32 %v811_v28, %v808_v20  ;;  %4555 = vst [vmem:[#allocation21_spill] sm:$0xff] %v3578_v42 }
  0xc1   :  { %v1390_v43 = vpack.c.b16 %v1375_v33, %v1374_v10  ;;  %391 = vst [vmem:[#allocation2 + $0x40] sm:$0x1] %v390_v12 }
  0xc2   :  { %v657_v45 = vsel %vm3528_vm7, %v504_v38, %v656_v29  ;;  %v660_v46 = vsel %vm3421_vm4, %v505_v39, %v659_v32  ;;  %v469_v47 = vpack.c.bf16 %v340_v40, %v340_v40  ;;  %v744_v49 = vld [vmem:[#allocation2 + $0x10] sm:$0xf]  ;;  %v813_v50 = vrot.slane %v812_v41, 4  ;;  %441 = vst [vmem:[#allocation2 + $0x44] sm:$0x1] %v440_v21 }
  0xc3   :  { %658 = vst [vmem:[#allocation2 + $0x18] sm:$0xf] %v657_v45  ;;  %2852 = vmatmul.msk.bf16.vlgmr.msrb.gmra.mxu0 %vm214_vm0, %v1390_v43  ;;  %v1163_v51 = vunpack.c.l.b16 %v744_v49  ;;  %v745_v53 = vld [vmem:[#allocation2 + $0x14] sm:$0x1]  ;;  %v2814_v54 = vrot.slane %v744_v49, 9  ;;  %v820_v55 = vshrl.u32 %v744_v49, 16 }
  0xc4   :  { %661 = vst [vmem:[#allocation2 + $0x1c] sm:$0x1] %v660_v46  ;;  %v507_v56 = vshrl.u32 %v469_v47, 16  ;;  %v818_v57 = vsel %vm3561_vm13, %v813_v50, %v817_v44  ;;  %v1311_v58 = vrot.slane %v745_v53, 5  ;;  %v510_v59 = vshll.u32 %v469_v47, 16 }
  0xc5   :  { %v307_v60 = vpop.f32.mrf.mxu1  ;;  %v1524_v61 = vpack.c.b16 %v1163_v51, %v1162_v7  ;;  %v3587_v62 = vunpack.c.l.b16 %v818_v57  ;;  %v822_v63 = vrot.slane %v820_v55, 4  ;;  %v823_v5 = vshll.u32 %v744_v49, 16  ;;  %v442_v55 = vld [vmem:[#allocation2 + $0x5c] sm:$0x1]  ;;  %v671_v57 = vld [vmem:[#allocation2 + $0x2c] sm:$0x1] }
  0xc6   :  { %v509_v2 = vrot.slane %v507_v56, 7  ;;  %v308_v3 = vadd.f32 %v307_v60, %v3499_v0  ;;  %v1312_v4 = vsel %vm3547_vm10, %v2814_v54, %v1311_v58  ;;  %v829_v7 = vshll.u32 %v745_v53, 16  ;;  %v392_v54 = vld [vmem:[#allocation2 + $0x58] sm:$0x1]  ;;  %v668_v56 = vld [vmem:[#allocation2 + $0x28] sm:$0xf] }
  0xc7   :  { %2884 = vmatmul.msk.bf16.vlgmr.msrb.gmra.mxu1 %vm214_vm0, %v1524_v61  ;;  %v1040_v10 = vpack.c.b16 %v3587_v62, %v1024_v52  ;;  %v1376_v11 = vunpack.c.l.b16 %v1312_v4  ;;  %v825_v18 = vrot.slane %v823_v5, 5  ;;  %v258_v19 = vpop.f32.mrf.mxu0  ;;  %v393_v6 = vsel %vm3421_vm4, 0, %v392_v54 }
  0xc8   :  { %v512_v13 = vor.u32 %v510_v59, %v509_v2  ;;  %v513_v14 = vrot.slane %v509_v2, 4  ;;  %v341_v17 = vmax.f32 %v308_v3, 0.0  ;;  %v831_v20 = vrot.slane %v829_v7, 5  ;;  %394 = vst [vmem:[#allocation2 + $0x58] sm:$0x1] %v393_v6 }
  0xc9   :  { %2780 = vmatmul.msk.bf16.vlgmr.msra.gmra.mxu2 %vm214_vm0, %v1040_v10  ;;  %v3599_v25 = vpack.c.b16 %v1376_v11, %v1375_v33  ;;  %v826_v32 = vor.u32 %v825_v18, %v822_v63  ;;  %v3620_v2 = vadd.f32 %v258_v19, %v3518_v16 }
  0xca   :  { %v663_v26 = vsel %vm3528_vm7, %v512_v13, %v662_v8  ;;  %v666_v27 = vsel %vm3421_vm4, %v513_v14, %v665_v9  ;;  %v470_v28 = vpack.c.bf16 %v341_v17, %v341_v17  ;;  %v746_v29 = vld [vmem:[#allocation2 + $0x18] sm:$0xf]  ;;  %v443_v8 = vsel %vm3429_vm5, 0, %v442_v55 }
  0xcb   :  { %664 = vst [vmem:[#allocation2 + $0x20] sm:$0xf] %v663_v26  ;;  %v1164_v34 = vunpack.c.l.b16 %v746_v29  ;;  %v747_v36 = vld [vmem:[#allocation2 + $0x1c] sm:$0x1]  ;;  %v2815_v37 = vrot.slane %v746_v29, 9  ;;  %v834_v38 = vshrl.u32 %v746_v29, 16 }
  0xcc   :  { %667 = vst [vmem:[#allocation2 + $0x24] sm:$0x1] %v666_v27  ;;  %v515_v39 = vshrl.u32 %v470_v28, 16  ;;  %v518_v40 = vshll.u32 %v470_v28, 16  ;;  %v1315_v33 = vrot.slane %v747_v36, 5  ;;  %v827_v41 = vrot.slane %v826_v32, 4 }
  0xcd   :  { %v309_v43 = vpop.f32.mrf.mxu1  ;;  %v3605_v44 = vpack.c.b16 %v1164_v34, %v1163_v51  ;;  %v836_v45 = vrot.slane %v834_v38, 4  ;;  %v837_v46 = vshll.u32 %v746_v29, 16  ;;  %v843_v47 = vshll.u32 %v747_v36, 16  ;;  %4556 = vst [vmem:[#allocation22_spill] sm:$0xff] %v3620_v2  ;;  %v3116_v26 = vld [vmem:[%s4522_s3 + $0x90] sm:$0xff] }
  0xce   :  { %v517_v49 = vrot.slane %v515_v39, 7  ;;  %v310_v50 = vadd.f32 %v309_v43, %v3499_v0  ;;  %v3610_v52 = vsel %vm3547_vm10, %v2815_v37, %v1315_v33  ;;  %v832_v53 = vsel %vm3561_vm13, %v827_v41, %v831_v20  ;;  %v674_v27 = vld [vmem:[#allocation2 + $0x30] sm:$0xf]  ;;  %444 = vst [vmem:[#allocation2 + $0x5c] sm:$0x1] %v443_v8  ;;  %1745 = vmatpush.bf16.msrb.mxu2 %v3116_v26 }
  0xcf   :  { %2805 = vmatmul.msk.bf16.gmra.mxu3 %vm214_vm0, %v3605_v44  ;;  %v1377_v51 = vunpack.c.l.b16 %v3610_v52  ;;  %v839_v58 = vrot.slane %v837_v46, 5  ;;  %v845_v59 = vrot.slane %v843_v47, 5  ;;  %v3617_v60 = vunpack.c.l.b16 %v832_v53  ;;  %v3622_v3 = vpop.f32.mrf.mxu0  ;;  %v677_v39 = vld [vmem:[#allocation2 + $0x34] sm:$0x1]  ;;  %v395_v43 = vld [vmem:[#allocation2 + $0x60] sm:$0x1] }
  0xd0   :  { %v520_v61 = vor.u32 %v518_v40, %v517_v49  ;;  %v521_v63 = vrot.slane %v517_v49, 4  ;;  %v342_v1 = vmax.f32 %v310_v50, 0.0  ;;  %4557 = vst [vmem:[#allocation23_spill] sm:$0xff] %v3622_v3  ;;  %v445_v49 = vld [vmem:[#allocation2 + $0x64] sm:$0x1] }
  0xd1   :  { %v3626_v4 = vpack.c.b16 %v1377_v51, %v1376_v11  ;;  %v840_v5 = vor.u32 %v839_v58, %v836_v45  ;;  %v446_v6 = vsel %vm3429_vm5, 0, %v445_v49 }
  0xd2   :  { %v669_v9 = vsel %vm3528_vm7, %v520_v61, %v668_v56  ;;  %v672_v10 = vsel %vm3421_vm4, %v521_v63, %v671_v57  ;;  %v471_v7 = vpack.c.bf16 %v342_v1, %v342_v1  ;;  %v748_v12 = vld [vmem:[#allocation2 + $0x20] sm:$0xf]  ;;  %447 = vst [vmem:[#allocation2 + $0x64] sm:$0x1] %v446_v6 }
  0xd3   :  { %670 = vst [vmem:[#allocation2 + $0x28] sm:$0xf] %v669_v9  ;;  %2853 = vmatmul.msk.bf16.gmra.mxu0 %vm214_vm0, %v3626_v4  ;;  %v1165_v13 = vunpack.c.l.b16 %v748_v12  ;;  %v841_v14 = vrot.slane %v840_v5, 4  ;;  %v749_v17 = vld [vmem:[#allocation2 + $0x24] sm:$0x1]  ;;  %v2816_v18 = vrot.slane %v748_v12, 9 }
  0xd4   :  { %673 = vst [vmem:[#allocation2 + $0x2c] sm:$0x1] %v672_v10  ;;  %v523_v19 = vshrl.u32 %v471_v7, 16  ;;  %v526_v20 = vshll.u32 %v471_v7, 16  ;;  %v1319_v21 = vrot.slane %v749_v17, 5  ;;  %v848_v36 = vshrl.u32 %v748_v12, 16 }
  0xd5   :  { %v312_v28 = vpop.f32.mrf.mxu1  ;;  %v1525_v29 = vpack.c.b16 %v1165_v13, %v1164_v34  ;;  %v846_v32 = vsel %vm3561_vm13, %v841_v14, %v845_v59  ;;  %v851_v37 = vshll.u32 %v748_v12, 16  ;;  %v857_v47 = vshll.u32 %v749_v17, 16 }
  0xd6   :  { %v525_v38 = vrot.slane %v523_v19, 7  ;;  %v313_v40 = vadd.f32 %v312_v28, %v3499_v0  ;;  %v3646_v33 = vunpack.c.l.b16 %v846_v32  ;;  %v1320_v41 = vsel %vm3547_vm10, %v2816_v18, %v1319_v21  ;;  %v680_v32 = vld [vmem:[#allocation2 + $0x38] sm:$0xf] }
  0xd7   :  { %2885 = vmatmul.msk.bf16.gmra.mxu1 %vm214_vm0, %v1525_v29  ;;  %v1378_v34 = vunpack.c.l.b16 %v1320_v41  ;;  %v850_v45 = vrot.slane %v848_v36, 4  ;;  %v853_v46 = vrot.slane %v851_v37, 5  ;;  %v263_v56 = vpop.f32.mrf.mxu0  ;;  %v859_v58 = vrot.slane %v857_v47, 5  ;;  %v398_v37 = vld [vmem:[#allocation2 + $0x68] sm:$0x1] }
  0xd8   :  { %v528_v50 = vor.u32 %v526_v20, %v525_v38  ;;  %v529_v53 = vrot.slane %v525_v38, 4  ;;  %v343_v54 = vmax.f32 %v313_v40, 0.0  ;;  %v3653_v55 = vpack.c.b16 %v3646_v33, %v3617_v60  ;;  %v683_v38 = vld [vmem:[#allocation2 + $0x3c] sm:$0x1]  ;;  %v448_v41 = vld [vmem:[#allocation2 + $0x6c] sm:$0x1] }
  0xd9   :  { %v854_v57 = vor.u32 %v853_v46, %v850_v45  ;;  %v396_v59 = vsel %vm3421_vm4, 0, %v395_v43  ;;  %v3667_v12 = vpack.c.b16 %v1378_v34, %v1377_v51  ;;  %v3684_v47 = vadd.f32 %v263_v56, %v3518_v16 }
  0xda   :  { %v675_v61 = vsel %vm3528_vm7, %v528_v50, %v674_v27  ;;  %v678_v63 = vsel %vm3421_vm4, %v529_v53, %v677_v39  ;;  %v472_v1 = vpack.c.bf16 %v343_v54, %v343_v54  ;;  %2781 = vmatmul.msk.bf16.gmra.mxu2 %vm214_vm0, %v3653_v55  ;;  %v750_v5 = vld [vmem:[#allocation2 + $0x28] sm:$0xf]  ;;  %397 = vst [vmem:[#allocation2 + $0x60] sm:$0x1] %v396_v59 }
  0xdb   :  { %676 = vst [vmem:[#allocation2 + $0x30] sm:$0xf] %v675_v61  ;;  %v1166_v8 = vunpack.c.l.b16 %v750_v5  ;;  %v751_v9 = vld [vmem:[#allocation2 + $0x2c] sm:$0x1]  ;;  %v2817_v10 = vrot.slane %v750_v5, 9  ;;  %v855_v7 = vrot.slane %v854_v57, 4 }
  0xdc   :  { %679 = vst [vmem:[#allocation2 + $0x34] sm:$0x1] %v678_v63  ;;  %v531_v14 = vshrl.u32 %v472_v1, 16  ;;  %v534_v17 = vshll.u32 %v472_v1, 16  ;;  %v1323_v18 = vrot.slane %v751_v9, 5  ;;  %v862_v19 = vshrl.u32 %v750_v5, 16 }
  0xdd   :  { %v314_v20 = vpop.f32.mrf.mxu1  ;;  %v3669_v21 = vpack.c.b16 %v1166_v8, %v1165_v13  ;;  %v860_v26 = vsel %vm3561_vm13, %v855_v7, %v859_v58  ;;  %v865_v27 = vshll.u32 %v750_v5, 16  ;;  %v871_v28 = vshll.u32 %v751_v9, 16  ;;  %4558 = vst [vmem:[#allocation24_spill] sm:$0xff] %v3684_v47 }
  0xde   :  { %v533_v29 = vrot.slane %v531_v14, 7  ;;  %v315_v52 = vadd.f32 %v314_v20, %v3499_v0  ;;  %v3676_v51 = vsel %vm3547_vm10, %v2817_v10, %v1323_v18  ;;  %v864_v36 = vrot.slane %v862_v19, 4 }
  0xdf   :  { %2806 = vmatmul.msk.bf16.gmra.mxu3 %vm214_vm0, %v3669_v21  ;;  %v4532_v13 = vunpack.c.l.b16 %v3676_v51  ;;  %v867_v39 = vrot.slane %v865_v27, 5  ;;  %v3681_v40 = vunpack.c.l.b16 %v860_v26  ;;  %v3686_v49 = vpop.f32.mrf.mxu0  ;;  %v873_v54 = vrot.slane %v871_v28, 5  ;;  %v401_v26 = vld [vmem:[#allocation2 + $0x70] sm:$0x1]  ;;  %v686_v28 = vld [vmem:[#allocation2 + $0x40] sm:$0xf] }
  0xe0   :  { %v536_v43 = vor.u32 %v534_v17, %v533_v29  ;;  %v537_v45 = vrot.slane %v533_v29, 4  ;;  %v344_v46 = vmax.f32 %v315_v52, 0.0  ;;  %4559 = vst [vmem:[#allocation25_spill] sm:$0xff] %v3686_v49  ;;  %v399_v57 = vsel %vm3421_vm4, 0, %v398_v37  ;;  %v689_v37 = vld [vmem:[#allocation2 + $0x44] sm:$0x1] }
  0xe1   :  { %v3690_v50 = vpack.c.b16 %v4532_v13, %v1378_v34  ;;  %v868_v53 = vor.u32 %v867_v39, %v864_v36  ;;  %400 = vst [vmem:[#allocation2 + $0x68] sm:$0x1] %v399_v57  ;;  %v449_v63 = vsel %vm3429_vm5, 0, %v448_v41  ;;  %v451_v36 = vld [vmem:[#allocation2 + $0x74] sm:$0x1]  ;;  %v402_v41 = vsel %vm3421_vm4, 0, %v401_v26 }
  0xe2   :  { %v681_v58 = vsel %vm3528_vm7, %v536_v43, %v680_v32  ;;  %v684_v59 = vsel %vm3421_vm4, %v537_v45, %v683_v38  ;;  %v473_v61 = vpack.c.bf16 %v344_v46, %v344_v46  ;;  %v752_v56 = vld [vmem:[#allocation2 + $0x30] sm:$0xf]  ;;  %450 = vst [vmem:[#allocation2 + $0x6c] sm:$0x1] %v449_v63 }
  0xe3   :  { %682 = vst [vmem:[#allocation2 + $0x38] sm:$0xf] %v681_v58  ;;  %2854 = vmatmul.msk.bf16.gmra.mxu0 %vm214_vm0, %v3690_v50  ;;  %v1167_v34 = vunpack.c.l.b16 %v752_v56  ;;  %v869_v1 = vrot.slane %v868_v53, 4  ;;  %v753_v5 = vld [vmem:[#allocation2 + $0x34] sm:$0x1]  ;;  %v2818_v6 = vrot.slane %v752_v56, 9 }
  0xe4   :  { %685 = vst [vmem:[#allocation2 + $0x3c] sm:$0x1] %v684_v59  ;;  %v539_v10 = vshrl.u32 %v473_v61, 16  ;;  %v542_v7 = vshll.u32 %v473_v61, 16  ;;  %v1327_v19 = vrot.slane %v753_v5, 5  ;;  %v876_v20 = vshrl.u32 %v752_v56, 16 }
  0xe5   :  { %v317_v14 = vpop.f32.mrf.mxu1  ;;  %v1526_v17 = vpack.c.b16 %v1167_v34, %v1166_v8  ;;  %v874_v18 = vsel %vm3561_vm13, %v869_v1, %v873_v54  ;;  %v879_v52 = vshll.u32 %v752_v56, 16  ;;  %v885_v39 = vshll.u32 %v753_v5, 16  ;;  %403 = vst [vmem:[#allocation2 + $0x70] sm:$0x1] %v402_v41 }
  0xe6   :  { %v541_v27 = vrot.slane %v539_v10, 7  ;;  %v318_v29 = vadd.f32 %v317_v14, %v3499_v0  ;;  %v3707_v32 = vunpack.c.l.b16 %v874_v18  ;;  %v3712_v8 = vsel %vm3547_vm10, %v2818_v6, %v1327_v19  ;;  %v3729_v6 = vld [vmem:[#allocation2 + $0x50] sm:$0xf] }
  0xe7   :  { %2886 = vmatmul.msk.bf16.gmra.mxu1 %vm214_vm0, %v1526_v17  ;;  %v878_v38 = vrot.slane %v876_v20, 4  ;;  %v268_v54 = vpop.f32.mrf.mxu0  ;;  %v4531_v57 = vunpack.c.l.b16 %v3712_v8  ;;  %v881_v58 = vrot.slane %v879_v52, 5  ;;  %v452_v59 = vsel %vm3429_vm5, 0, %v451_v36 }
  0xe8   :  { %v544_v43 = vor.u32 %v542_v7, %v541_v27  ;;  %v545_v45 = vrot.slane %v541_v27, 4  ;;  %v345_v46 = vmax.f32 %v318_v29, 0.0  ;;  %v3718_v53 = vpack.c.b16 %v3707_v32, %v3681_v40  ;;  %453 = vst [vmem:[#allocation2 + $0x74] sm:$0x1] %v452_v59  ;;  %v695_v59 = vld [vmem:[#allocation2 + $0x5c] sm:$0x1] }
  0xe9   :  { %v887_v5 = vrot.slane %v885_v39, 5  ;;  %v882_v17 = vor.u32 %v881_v58, %v878_v38  ;;  %v692_v58 = vld [vmem:[#allocation2 + $0x58] sm:$0xf]  ;;  %v707_v47 = vld [vmem:[#allocation2 + $0x6c] sm:$0x1] }
  0xea   :  { %v687_v61 = vsel %vm3528_vm7, %v544_v43, %v686_v28  ;;  %v690_v56 = vsel %vm3421_vm4, %v545_v45, %v689_v37  ;;  %v474_v63 = vpack.c.bf16 %v345_v46, %v345_v46  ;;  %2782 = vmatmul.msk.bf16.gmra.mxu2 %vm214_vm0, %v3718_v53  ;;  %v754_v1 = vld [vmem:[#allocation2 + $0x38] sm:$0xf]  ;;  %v761_v45 = vld [vmem:[#allocation2 + $0x54] sm:$0x1] }
  0xeb   :  { %688 = vst [vmem:[#allocation2 + $0x40] sm:$0xf] %v687_v61  ;;  %v1168_v10 = vunpack.c.l.b16 %v754_v1  ;;  %v755_v7 = vld [vmem:[#allocation2 + $0x3c] sm:$0x1]  ;;  %v2819_v14 = vrot.slane %v754_v1, 9  ;;  %v890_v18 = vshrl.u32 %v754_v1, 16 }
  0xec   :  { %691 = vst [vmem:[#allocation2 + $0x44] sm:$0x1] %v690_v56  ;;  %v547_v19 = vshrl.u32 %v474_v63, 16  ;;  %v550_v20 = vshll.u32 %v474_v63, 16  ;;  %v1331_v26 = vrot.slane %v755_v7, 5  ;;  %v893_v27 = vshll.u32 %v754_v1, 16 }
  0xed   :  { %v319_v28 = vpop.f32.mrf.mxu1  ;;  %v3731_v29 = vpack.c.b16 %v1168_v10, %v1167_v34  ;;  %v883_v52 = vrot.slane %v882_v17, 4  ;;  %v892_v36 = vrot.slane %v890_v18, 4  ;;  %v899_v37 = vshll.u32 %v755_v7, 16  ;;  %v404_v46 = vld [vmem:[#allocation2 + $0x78] sm:$0x1] }
  0xee   :  { %v549_v39 = vrot.slane %v547_v19, 7  ;;  %v320_v41 = vadd.f32 %v319_v28, %v3499_v0  ;;  %v3736_v43 = vsel %vm3547_vm10, %v2819_v14, %v1331_v26  ;;  %v895_v38 = vrot.slane %v893_v27, 5 }
  0xef   :  { %2807 = vmatmul.msk.bf16.gmra.mxu3 %vm214_vm0, %v3731_v29  ;;  %v4529_v34 = vunpack.c.l.b16 %v3736_v43  ;;  %v888_v61 = vsel %vm3561_vm13, %v883_v52, %v887_v5  ;;  %v3744_v56 = vadd.f32 %v268_v54, %v3518_v16  ;;  %v2820_v63 = vrot.slane %v3729_v6, 9  ;;  %v3747_v18 = vpop.f32.mrf.mxu0 }
  0xf0   :  { %v552_v1 = vor.u32 %v550_v20, %v549_v39  ;;  %v553_v7 = vrot.slane %v549_v39, 4  ;;  %v346_v14 = vmax.f32 %v320_v41, 0.0  ;;  %v896_v17 = vor.u32 %v895_v38, %v892_v36  ;;  %4561 = vst [vmem:[#allocation27_spill] sm:$0xff] %v3747_v18  ;;  %v454_v39 = vld [vmem:[#allocation2 + $0x7c] sm:$0x1] }
  0xf1   :  { %4560 = vst [vmem:[#allocation26_spill] sm:$0xff] %v3744_v56  ;;  %v3753_v19 = vpack.c.b16 %v4529_v34, %v4531_v57  ;;  %v901_v26 = vrot.slane %v899_v37, 5  ;;  %v1335_v27 = vrot.slane %v761_v45, 5  ;;  %v405_v54 = vsel %vm3421_vm4, 0, %v404_v46  ;;  %v457_v34 = vld [vmem:[#allocation2 + $0x84] sm:$0x1] }
  0xf2   :  { %v693_v5 = vsel %vm3528_vm7, %v552_v1, %v692_v58  ;;  %v696_v20 = vsel %vm3421_vm4, %v553_v7, %v695_v59  ;;  %v475_v28 = vpack.c.bf16 %v346_v14, %v346_v14  ;;  %v3761_v52 = vld [vmem:[#allocation2 + $0x40] sm:$0xf]  ;;  %v897_v36 = vrot.slane %v896_v17, 4  ;;  %406 = vst [vmem:[#allocation2 + $0x78] sm:$0x1] %v405_v54  ;;  %v3115_v58 = vld [vmem:[%s4522_s3 + $0x88] sm:$0xff] }
  0xf3   :  { %4562 = vst [vmem:[#allocation28_spill] sm:$0xff] %v3753_v19  ;;  %2855 = vmatmul.msk.bf16.gmra.mxu0 %vm214_vm0, %v3753_v19  ;;  %v4530_v37 = vunpack.c.l.b16 %v3761_v52  ;;  %v1169_v46 = vunpack.c.l.b16 %v3729_v6  ;;  %v698_v59 = vld [vmem:[#allocation2 + $0x60] sm:$0xf]  ;;  %v701_v1 = vld [vmem:[#allocation2 + $0x64] sm:$0x1]  ;;  %v3774_v17 = vunpack.c.l.b16 %v888_v61  ;;  %v455_v11 = vsel %vm3429_vm5, 0, %v454_v39  ;;  %1746 = vmatpush.bf16.msrb.mxu2 %v3115_v58 }
  0xf4   :  { %694 = vst [vmem:[#allocation2 + $0x58] sm:$0xf] %v693_v5  ;;  %v555_v41 = vshrl.u32 %v475_v28, 16  ;;  %v902_v38 = vsel %vm3561_vm13, %v897_v36, %v901_v26  ;;  %v3780_v5 = vsel %vm3547_vm10, %v2820_v63, %v1335_v27  ;;  %v407_v26 = vld [vmem:[#allocation2 + $0x80] sm:$0x1]  ;;  %v558_v36 = vshll.u32 %v475_v28, 16 }
  0xf5   :  { %697 = vst [vmem:[#allocation2 + $0x5c] sm:$0x1] %v696_v20  ;;  %v322_v7 = vpop.f32.mrf.mxu1  ;;  %v1527_v14 = vpack.c.b16 %v4530_v37, %v1168_v10  ;;  %v3776_v54 = vunpack.c.l.b16 %v902_v38  ;;  %v904_v61 = vshrl.u32 %v3729_v6, 16  ;;  %v907_v63 = vshll.u32 %v3729_v6, 16 }
  0xf6   :  { %v557_v20 = vrot.slane %v555_v41, 7  ;;  %v323_v9 = vadd.f32 %v322_v7, %v3499_v0  ;;  %456 = vst [vmem:[#allocation2 + $0x7c] sm:$0x1] %v455_v11  ;;  %v913_v27 = vshll.u32 %v761_v45, 16  ;;  %v408_v39 = vsel %vm3421_vm4, 0, %v407_v26 }
  0xf7   :  { %2887 = vmatmul.msk.bf16.gmra.mxu1 %vm214_vm0, %v1527_v14  ;;  %v3788_v10 = vpack.c.b16 %v3776_v54, %v3774_v17  ;;  %v273_v58 = vpop.f32.mrf.mxu0  ;;  %v1382_v7 = vunpack.c.l.b16 %v3780_v5  ;;  %v906_v14 = vrot.slane %v904_v61, 4  ;;  %v909_v37 = vrot.slane %v907_v63, 5  ;;  %409 = vst [vmem:[#allocation2 + $0x80] sm:$0x1] %v408_v39 }
  0xf8   :  { %v560_v28 = vor.u32 %v558_v36, %v557_v20  ;;  %v561_v41 = vrot.slane %v557_v20, 4  ;;  %v347_v38 = vmax.f32 %v323_v9, 0.0  ;;  %v915_v57 = vrot.slane %v913_v27, 5 }
  0xf9   :  { %v458_v45 = vsel %vm3429_vm5, 0, %v457_v34  ;;  %v910_v36 = vor.u32 %v909_v37, %v906_v14  ;;  %v410_v14 = vld [vmem:[#allocation2 + $0x88] sm:$0x1] }
  0xfa   :  { %v699_v11 = vsel %vm3528_vm7, %v560_v28, %v698_v59  ;;  %v702_v13 = vsel %vm3421_vm4, %v561_v41, %v701_v1  ;;  %v476_v6 = vpack.c.bf16 %v347_v38, %v347_v38  ;;  %2783 = vmatmul.msk.bf16.gmra.mxu2 %vm214_vm0, %v3788_v10  ;;  %459 = vst [vmem:[#allocation2 + $0x84] sm:$0x1] %v458_v45  ;;  %v460_v45 = vld [vmem:[#allocation2 + $0x8c] sm:$0x1] }
  0xfb   :  { %v762_v9 = vld [vmem:[#allocation2 + $0x58] sm:$0xf]  ;;  %700 = vst [vmem:[#allocation2 + $0x60] sm:$0xf] %v699_v11  ;;  %v911_v38 = vrot.slane %v910_v36, 4 }
  0xfc   :  { %v1170_v5 = vunpack.c.l.b16 %v762_v9  ;;  %v2821_v26 = vrot.slane %v762_v9, 9  ;;  %v763_v20 = vld [vmem:[#allocation2 + $0x5c] sm:$0x1]  ;;  %v918_v61 = vshrl.u32 %v762_v9, 16  ;;  %703 = vst [vmem:[#allocation2 + $0x64] sm:$0x1] %v702_v13 }
  0xfd   :  { %v563_v59 = vshrl.u32 %v476_v6, 16  ;;  %v566_v63 = vshll.u32 %v476_v6, 16  ;;  %v1339_v27 = vrot.slane %v763_v20, 5  ;;  %v921_v1 = vshll.u32 %v762_v9, 16  ;;  %v324_v28 = vpop.f32.mrf.mxu1  ;;  %v704_v13 = vld [vmem:[#allocation2 + $0x68] sm:$0xf] }
  0xfe   :  { %v1181_v41 = vpack.c.b16 %v1170_v5, %v1169_v46  ;;  %v920_v56 = vrot.slane %v918_v61, 4  ;;  %v927_v18 = vshll.u32 %v763_v20, 16  ;;  %v325_v34 = vadd.f32 %v324_v28, %v3499_v0  ;;  %v722_v2 = vld [vmem:[#allocation2 + $0x80] sm:$0xf] }
  0xff   :  { %v565_v39 = vrot.slane %v563_v59, 7  ;;  %v3806_v11 = vsel %vm3547_vm10, %v2821_v26, %v1339_v27  ;;  %v923_v37 = vrot.slane %v921_v1, 5  ;;  %v916_v46 = vsel %vm3561_vm13, %v911_v38, %v915_v57  ;;  %v3815_v59 = vpop.f32.mrf.mxu0 }
 0x100   :  { %2808 = vmatmul.msk.bf16.gmra.mxu3 %vm214_vm0, %v1181_v41  ;;  %v4533_v6 = vunpack.c.l.b16 %v3806_v11  ;;  %v3813_v9 = vadd.f32 %v273_v58, %v3518_v16  ;;  %v348_v61 = vmax.f32 %v325_v34, 0.0  ;;  %4564 = vst [vmem:[#allocation30_spill] sm:$0xff] %v3815_v59  ;;  %v929_v1 = vrot.slane %v927_v18, 5 }
 0x101   :  { %v568_v20 = vor.u32 %v566_v63, %v565_v39  ;;  %v569_v36 = vrot.slane %v565_v39, 4  ;;  %v924_v26 = vor.u32 %v923_v37, %v920_v56  ;;  %v411_v28 = vsel %vm3421_vm4, 0, %v410_v14 }
 0x102   :  { %4563 = vst [vmem:[#allocation29_spill] sm:$0xff] %v3813_v9  ;;  %v1394_v27 = vpack.c.b16 %v4533_v6, %v1382_v7  ;;  %v461_v57 = vsel %vm3429_vm5, 0, %v460_v45  ;;  %v477_v41 = vpack.c.bf16 %v348_v61, %v348_v61  ;;  %v764_v56 = vld [vmem:[#allocation2 + $0x60] sm:$0xf]  ;;  %v1032_v7 = vunpack.c.l.b16 %v916_v46  ;;  %v710_v61 = vld [vmem:[#allocation2 + $0x70] sm:$0xf] }
 0x103   :  { %v705_v58 = vsel %vm3528_vm7, %v568_v20, %v704_v13  ;;  %v708_v63 = vsel %vm3421_vm4, %v569_v36, %v707_v47  ;;  %v925_v38 = vrot.slane %v924_v26, 4  ;;  %412 = vst [vmem:[#allocation2 + $0x88] sm:$0x1] %v411_v28  ;;  %v1171_v18 = vunpack.c.l.b16 %v764_v56  ;;  %v765_v39 = vld [vmem:[#allocation2 + $0x64] sm:$0x1] }
 0x104   :  { %706 = vst [vmem:[#allocation2 + $0x68] sm:$0xf] %v705_v58  ;;  %2856 = vmatmul.msk.bf16.gmra.mxu0 %vm214_vm0, %v1394_v27  ;;  %v932_v34 = vshrl.u32 %v764_v56, 16  ;;  %v4565_v37 = vunpack.c.l.b16 %v3676_v51  ;;  %v4566_v14 = vunpack.c.l.b16 %v3712_v8  ;;  %v571_v13 = vshrl.u32 %v477_v41, 16  ;;  %v413_v58 = vld [vmem:[#allocation2 + $0x90] sm:$0x1] }
 0x105   :  { %709 = vst [vmem:[#allocation2 + $0x6c] sm:$0x1] %v708_v63  ;;  %v930_v47 = vsel %vm3561_vm13, %v925_v38, %v929_v1  ;;  %v2822_v20 = vrot.slane %v764_v56, 9  ;;  %v574_v36 = vshll.u32 %v477_v41, 16  ;;  %v327_v26 = vpop.f32.mrf.mxu1  ;;  %v1528_v27 = vpack.c.b16 %v1171_v18, %v1170_v5  ;;  %v463_v63 = vld [vmem:[#allocation2 + $0x94] sm:$0x1] }
 0x106   :  { %v3832_v45 = vpack.c.b16 %v4566_v14, %v4565_v37  ;;  %v3836_v28 = vunpack.c.l.b16 %v930_v47  ;;  %v1343_v46 = vrot.slane %v765_v39, 5  ;;  %462 = vst [vmem:[#allocation2 + $0x8c] sm:$0x1] %v461_v57  ;;  %v573_v51 = vrot.slane %v571_v13, 7  ;;  %v713_v6 = vld [vmem:[#allocation2 + $0x74] sm:$0x1] }
 0x107   :  { %v328_v8 = vadd.f32 %v327_v26, %v3499_v0  ;;  %v935_v37 = vshll.u32 %v764_v56, 16  ;;  %v941_v14 = vshll.u32 %v765_v39, 16  ;;  %2888 = vmatmul.msk.bf16.gmra.mxu1 %vm214_vm0, %v1528_v27  ;;  %v934_v41 = vrot.slane %v932_v34, 4  ;;  %v278_v26 = vpop.f32.mrf.mxu0 }
 0x108   :  { %v1044_v1 = vpack.c.b16 %v3836_v28, %v1032_v7  ;;  %v414_v5 = vsel %vm3421_vm4, 0, %v413_v58  ;;  %v464_v38 = vsel %vm3429_vm5, 0, %v463_v63  ;;  %v576_v57 = vor.u32 %v574_v36, %v573_v51 }
 0x109   :  { %v577_v47 = vrot.slane %v573_v51, 4  ;;  %v349_v13 = vmax.f32 %v328_v8, 0.0  ;;  %415 = vst [vmem:[#allocation2 + $0x90] sm:$0x1] %v414_v5  ;;  %v3847_v56 = vsel %vm3547_vm10, %v2822_v20, %v1343_v46  ;;  %v937_v39 = vrot.slane %v935_v37, 5 }
 0x10a   :  { %465 = vst [vmem:[#allocation2 + $0x94] sm:$0x1] %v464_v38  ;;  %v711_v34 = vsel %vm3528_vm7, %v576_v57, %v710_v61  ;;  %2784 = vmatmul.msk.bf16.gmra.mxu2 %vm214_vm0, %v1044_v1  ;;  %v943_v58 = vrot.slane %v941_v14, 5 }
 0x10b   :  { %v714_v35 = vsel %vm3421_vm4, %v577_v47, %v713_v6  ;;  %v478_v36 = vpack.c.bf16 %v349_v13, %v349_v13  ;;  %v3856_v27 = vld [vmem:[#allocation2 + $0x68] sm:$0xf]  ;;  %712 = vst [vmem:[#allocation2 + $0x70] sm:$0xf] %v711_v34  ;;  %v938_v8 = vor.u32 %v937_v39, %v934_v41  ;;  %v3114_v13 = vld [vmem:[%s4522_s3 + $0x80] sm:$0xff] }
 0x10c   :  { %v1172_v20 = vunpack.c.l.b16 %v3856_v27  ;;  %v2823_v46 = vrot.slane %v3856_v27, 9  ;;  %v767_v51 = vld [vmem:[#allocation2 + $0x6c] sm:$0x1]  ;;  %v946_v37 = vshrl.u32 %v3856_v27, 16  ;;  %715 = vst [vmem:[#allocation2 + $0x74] sm:$0x1] %v714_v35  ;;  %1747 = vmatpush.bf16.msrb.mxu2 %v3114_v13 }
 0x10d   :  { %v579_v61 = vshrl.u32 %v478_v36, 16  ;;  %v582_v63 = vshll.u32 %v478_v36, 16  ;;  %v1347_v5 = vrot.slane %v767_v51, 5  ;;  %v949_v6 = vshll.u32 %v3856_v27, 16  ;;  %v329_v38 = vpop.f32.mrf.mxu1  ;;  %v716_v36 = vld [vmem:[#allocation2 + $0x78] sm:$0xf] }
 0x10e   :  { %v3862_v1 = vpack.c.b16 %v1172_v20, %v1171_v18  ;;  %v939_v57 = vrot.slane %v938_v8, 4  ;;  %v948_v14 = vrot.slane %v946_v37, 4  ;;  %v955_v47 = vshll.u32 %v767_v51, 16  ;;  %v719_v27 = vld [vmem:[#allocation2 + $0x7c] sm:$0x1] }
 0x10f   :  { %v581_v34 = vrot.slane %v579_v61, 7  ;;  %v330_v41 = vadd.f32 %v329_v38, %v3499_v0  ;;  %v3870_v39 = vsel %vm3547_vm10, %v2823_v46, %v1347_v5  ;;  %v951_v35 = vrot.slane %v949_v6, 5  ;;  %v3121_v46 = vld [vmem:[%s4522_s3 + $0xb8] sm:$0xff]  ;;  %v3884_v7 = vpop.f32.mrf.mxu0 }
 0x110   :  { %2809 = vmatmul.msk.bf16.gmra.mxu3 %vm214_vm0, %v3862_v1  ;;  %v944_v8 = vsel %vm3561_vm13, %v939_v57, %v943_v58  ;;  %v3879_v37 = vadd.f32 %v278_v26, %v3518_v16  ;;  %4568 = vst [vmem:[#allocation32_spill] sm:$0xff] %v3884_v7  ;;  %v1646_v18 = vshrl.u32 %v3761_v52, 16  ;;  %v1649_v51 = vshll.u32 %v3761_v52, 16 }
 0x111   :  { %v584_v61 = vor.u32 %v582_v63, %v581_v34  ;;  %v585_v5 = vrot.slane %v581_v34, 4  ;;  %v350_v6 = vmax.f32 %v330_v41, 0.0  ;;  %v952_v38 = vor.u32 %v951_v35, %v948_v14  ;;  %1886 = vmatpush.bf16.msrb.mxu3 %v3121_v46 }
 0x112   :  { %4567 = vst [vmem:[#allocation31_spill] sm:$0xff] %v3879_v37  ;;  %v4569_v58 = vunpack.c.l.b16 %v3847_v56  ;;  %v4570_v26 = vunpack.c.l.b16 %v3870_v39  ;;  %v957_v13 = vrot.slane %v955_v47, 5  ;;  %v3898_v41 = vld [vmem:[#allocation2 + $0x70] sm:$0xf]  ;;  %v3900_v37 = vld [vmem:[#allocation2 + $0x44] sm:$0x1]  ;;  %v3905_v47 = vunpack.c.l.b16 %v944_v8 }
 0x113   :  { %v717_v63 = vsel %vm3528_vm7, %v584_v61, %v716_v36  ;;  %v720_v14 = vsel %vm3421_vm4, %v585_v5, %v719_v27  ;;  %v479_v34 = vpack.c.bf16 %v350_v6, %v350_v6  ;;  %v953_v35 = vrot.slane %v952_v38, 4  ;;  %v3907_v46 = vld [vmem:[#allocation2 + $0x74] sm:$0x1]  ;;  %v3125_v8 = vld [vmem:[%s4522_s3 + $0xd8] sm:$0xff] }
 0x114   :  { %v3892_v57 = vpack.c.b16 %v4570_v26, %v4569_v58  ;;  %718 = vst [vmem:[#allocation2 + $0x78] sm:$0xf] %v717_v63  ;;  %v4534_v58 = vunpack.c.l.b16 %v3898_v41  ;;  %v960_v36 = vshrl.u32 %v3898_v41, 16  ;;  %v2924_v27 = vrot.slane %v3761_v52, 9  ;;  %1996 = vmatpush.bf16.msra.mxu0 %v3125_v8 }
 0x115   :  { %721 = vst [vmem:[#allocation2 + $0x7c] sm:$0x1] %v720_v14  ;;  %v587_v61 = vshrl.u32 %v479_v34, 16  ;;  %v958_v5 = vsel %vm3561_vm13, %v953_v35, %v957_v13  ;;  %v2824_v6 = vrot.slane %v3898_v41, 9  ;;  %v1351_v38 = vrot.slane %v3907_v46, 5  ;;  %v332_v26 = vpop.f32.mrf.mxu1  ;;  %v3120_v13 = vld [vmem:[%s4522_s3 + $0xb0] sm:$0xff] }
 0x116   :  { %4571 = vst [vmem:[#allocation33_spill] sm:$0xff] %v3892_v57  ;;  %2857 = vmatmul.msk.bf16.gmra.mxu0 %vm214_vm0, %v3892_v57  ;;  %v1529_v63 = vpack.c.b16 %v4534_v58, %v1172_v20  ;;  %v3920_v7 = vunpack.c.l.b16 %v958_v5  ;;  %v962_v9 = vrot.slane %v960_v36, 4  ;;  %v963_v14 = vshll.u32 %v3898_v41, 16  ;;  %v725_v20 = vld [vmem:[#allocation2 + $0x84] sm:$0x1]  ;;  %1887 = vmatpush.bf16.msrb.mxu3 %v3120_v13 }
 0x117   :  { %v3926_v35 = vrot.slane %v1646_v18, 4  ;;  %v589_v59 = vrot.slane %v587_v61, 7  ;;  %v590_v49 = vshll.u32 %v479_v34, 16  ;;  %v333_v3 = vadd.f32 %v332_v26, %v3499_v0  ;;  %v3124_v18 = vld [vmem:[%s4522_s3 + $0xd0] sm:$0xff] }
 0x118   :  { %v3929_v22 = vrot.slane %v1649_v51, 5  ;;  %2889 = vmatmul.msk.bf16.gmra.mxu1 %vm214_vm0, %v1529_v63  ;;  %v3934_v36 = vpack.c.b16 %v3920_v7, %v3905_v47  ;;  %v965_v5 = vrot.slane %v963_v14, 5  ;;  %v1809_v34 = vrot.slane %v3900_v37, 5  ;;  %v283_v63 = vpop.f32.mrf.mxu0  ;;  %1997 = vmatpush.bf16.msra.mxu0 %v3124_v18 }
 0x119   :  { %v592_v61 = vor.u32 %v590_v49, %v589_v59  ;;  %v593_v26 = vrot.slane %v589_v59, 4  ;;  %v351_v8 = vmax.f32 %v333_v3, 0.0  ;;  %v3942_v51 = vsel %vm3547_vm10, %v2824_v6, %v1351_v38 }
 0x11a   :  { %v966_v58 = vor.u32 %v965_v5, %v962_v9  ;;  %v3945_v23 = vadd.f32 %v283_v63, %v3518_v16  ;;  %v1655_v14 = vshll.u32 %v3900_v37, 16  ;;  %v3950_v13 = vsel %vm3547_vm10, %v2924_v27, %v1809_v34  ;;  %2785 = vmatmul.msk.bf16.gmra.mxu2 %vm214_vm0, %v3934_v36  ;;  %v3119_v37 = vld [vmem:[%s4522_s3 + $0xa8] sm:$0xff] }
 0x11b   :  { %v723_v49 = vsel %vm3528_vm7, %v592_v61, %v722_v2  ;;  %v726_v3 = vsel %vm3421_vm4, %v593_v26, %v725_v20  ;;  %v480_v59 = vpack.c.bf16 %v351_v8, %v351_v8  ;;  %v3958_v9 = vld [vmem:[#allocation2 + $0x78] sm:$0xf]  ;;  %v969_v6 = vshll.u32 %v3907_v46, 16  ;;  %1888 = vmatpush.bf16.msrb.mxu3 %v3119_v37  ;;  %v728_v37 = vld [vmem:[#allocation2 + $0x88] sm:$0xf] }
 0x11c   :  { %4572 = vst [vmem:[#allocation34_spill] sm:$0xff] %v3945_v23  ;;  %v3129_v2 = vld [vmem:[%s4522_s3 + $0xf8] sm:$0xff]  ;;  %v1174_v27 = vunpack.c.l.b16 %v3958_v9  ;;  %v2825_v38 = vrot.slane %v3958_v9, 9  ;;  %v1652_v46 = vor.u32 %v3929_v22, %v3926_v35  ;;  %v974_v61 = vshrl.u32 %v3958_v9, 16  ;;  %v3123_v22 = vld [vmem:[%s4522_s3 + $0xc8] sm:$0xff]  ;;  %v3118_v35 = vld [vmem:[%s4522_s3 + $0xa0] sm:$0xff] }
 0x11d   :  { %724 = vst [vmem:[#allocation2 + $0x80] sm:$0xf] %v723_v49  ;;  %v771_v20 = vld [vmem:[#allocation2 + $0x7c] sm:$0x1]  ;;  %v595_v18 = vshrl.u32 %v480_v59, 16  ;;  %2132 = vmatpush.bf16.msra.mxu1 %v3129_v2  ;;  %v598_v8 = vshll.u32 %v480_v59, 16  ;;  %v334_v63 = vpop.f32.mrf.mxu1  ;;  %v4573_v49 = vunpack.c.l.b16 %v3898_v41  ;;  %1998 = vmatpush.bf16.msra.mxu0 %v3123_v22 }
 0x11e   :  { %727 = vst [vmem:[#allocation2 + $0x84] sm:$0x1] %v726_v3  ;;  %v1355_v34 = vrot.slane %v771_v20, 5  ;;  %v967_v42 = vrot.slane %v966_v58, 4  ;;  %v977_v5 = vshll.u32 %v3958_v9, 16  ;;  %v3128_v3 = vld [vmem:[%s4522_s3 + $0xf0] sm:$0xff]  ;;  %v335_v41 = vadd.f32 %v334_v63, %v3499_v0 }
 0x11f   :  { %v3976_v23 = vpack.c.b16 %v1174_v27, %v4573_v49  ;;  %v597_v59 = vrot.slane %v595_v18, 7  ;;  %v976_v9 = vrot.slane %v974_v61, 4  ;;  %v731_v2 = vld [vmem:[#allocation2 + $0x8c] sm:$0x1]  ;;  %v971_v26 = vrot.slane %v969_v6, 5  ;;  %1889 = vmatpush.bf16.msrb.mxu3 %v3118_v35  ;;  %v3122_v0 = vld [vmem:[%s4522_s3 + $0xc0] sm:$0xff] }
 0x120   :  { %v3991_v58 = vsel %vm3547_vm10, %v2825_v38, %v1355_v34  ;;  %v979_v30 = vrot.slane %v977_v5, 5  ;;  %v983_v16 = vshll.u32 %v771_v20, 16  ;;  %v352_v19 = vmax.f32 %v335_v41, 0.0  ;;  %v3127_v38 = vld [vmem:[%s4522_s3 + $0xe8] sm:$0xff] }
 0x121   :  { %2810 = vmatmul.msk.bf16.gmra.mxu3 %vm214_vm0, %v3976_v23  ;;  %v1387_v49 = vunpack.c.l.b16 %v3991_v58  ;;  %v600_v57 = vor.u32 %v598_v8, %v597_v59  ;;  %v601_v18 = vrot.slane %v597_v59, 4  ;;  %2133 = vmatpush.bf16.msra.mxu1 %v3128_v3  ;;  %v4574_v34 = vunpack.c.l.b16 %v3736_v43  ;;  %v3132_v58 = vld [vmem:[%s4522_s3 + $0x110] sm:$0xff] }
 0x122   :  { %v4575_v6 = vunpack.c.l.b16 %v3950_v13  ;;  %v4576_v20 = vunpack.c.l.b16 %v3942_v51  ;;  %v980_v8 = vor.u32 %v979_v30, %v976_v9  ;;  %v1657_v63 = vrot.slane %v1655_v14, 5  ;;  %1999 = vmatpush.bf16.msra.mxu0 %v3122_v0 }
 0x123   :  { %v1653_v22 = vrot.slane %v1652_v46, 4  ;;  %v729_v35 = vsel %vm3528_vm7, %v600_v57, %v728_v37  ;;  %v732_v3 = vsel %vm3421_vm4, %v601_v18, %v731_v2  ;;  %v481_v43 = vpack.c.bf16 %v352_v19, %v352_v19 }
 0x124   :  { %v4006_v5 = vpack.c.b16 %v4575_v6, %v4574_v34  ;;  %v4012_v61 = vpack.c.b16 %v1387_v49, %v4576_v20  ;;  %v772_v59 = vld [vmem:[#allocation2 + $0x80] sm:$0xf]  ;;  %v972_v41 = vsel %vm3561_vm13, %v967_v42, %v971_v26  ;;  %730 = vst [vmem:[#allocation2 + $0x88] sm:$0xf] %v729_v35  ;;  %v981_v6 = vrot.slane %v980_v8, 4 }
 0x125   :  { %v1175_v34 = vunpack.c.l.b16 %v772_v59  ;;  %v985_v30 = vrot.slane %v983_v16, 5  ;;  %733 = vst [vmem:[#allocation2 + $0x8c] sm:$0x1] %v732_v3  ;;  %v603_v14 = vshrl.u32 %v481_v43, 16  ;;  %v988_v46 = vshrl.u32 %v772_v59, 16  ;;  %2134 = vmatpush.bf16.msra.mxu1 %v3127_v38  ;;  %v3126_v16 = vld [vmem:[%s4522_s3 + $0xe0] sm:$0xff] }
 0x126   :  { %2858 = vmatmul.msk.bf16.gmra.mxu0 %vm214_vm0, %v4012_v61  ;;  %v1658_v57 = vsel %vm3561_vm13, %v1653_v22, %v1657_v63  ;;  %v4026_v42 = vunpack.c.l.b16 %v972_v41  ;;  %v773_v26 = vld [vmem:[#allocation2 + $0x84] sm:$0x1]  ;;  %v991_v9 = vshll.u32 %v772_v59, 16  ;;  %v606_v18 = vshll.u32 %v481_v43, 16  ;;  %v734_v38 = vld [vmem:[#allocation2 + $0x90] sm:$0xf] }
 0x127   :  { %v1530_v19 = vpack.c.b16 %v1175_v34, %v1174_v27  ;;  %v986_v37 = vsel %vm3561_vm13, %v981_v6, %v985_v30  ;;  %v605_v2 = vrot.slane %v603_v14, 7  ;;  %v990_v0 = vrot.slane %v988_v46, 4  ;;  %v737_v8 = vld [vmem:[#allocation2 + $0x94] sm:$0x1] }
 0x128   :  { %v4031_v20 = vunpack.c.l.b16 %v986_v37  ;;  %v2826_v27 = vrot.slane %v772_v59, 9  ;;  %v993_v63 = vrot.slane %v991_v9, 5  ;;  %v4034_v22 = vunpack.c.l.b16 %v1658_v57  ;;  %v3133_v57 = vld [vmem:[%s4522_s3 + $0x118] sm:$0xff] }
 0x129   :  { %2890 = vmatmul.msk.bf16.gmra.mxu1 %vm214_vm0, %v1530_v19  ;;  %v608_v35 = vor.u32 %v606_v18, %v605_v2  ;;  %v609_v3 = vrot.slane %v605_v2, 4  ;;  %v1359_v6 = vrot.slane %v773_v26, 5  ;;  %v4051_v19 = vld [vmem:[#allocation2 + $0x48] sm:$0xf]  ;;  %v4577_v37 = vunpack.c.l.b16 %v3806_v11  ;;  %2250 = vmatpush.bf16.msra.mxu2 %v3133_v57 }
 0x12a   :  { %v4038_v41 = vpack.c.b16 %v4031_v20, %v4026_v42  ;;  %2135 = vmatpush.bf16.msra.mxu1 %v3126_v16  ;;  %v994_v43 = vor.u32 %v993_v63, %v990_v0  ;;  %v4578_v9 = vunpack.c.l.b16 %v3847_v56  ;;  %v997_v0 = vshll.u32 %v773_v26, 16 }
 0x12b   :  { %v735_v14 = vsel %vm3528_vm7, %v608_v35, %v734_v38  ;;  %v738_v59 = vsel %vm3421_vm4, %v609_v3, %v737_v8  ;;  %v774_v46 = vld [vmem:[#allocation2 + $0x88] sm:$0xf]  ;;  %v1360_v38 = vsel %vm3547_vm10, %v2826_v27, %v1359_v6  ;;  %v4065_v3 = vld [vmem:[#allocation2 + $0x4c] sm:$0x1]  ;;  %v3022_v6 = vrot.slane %v4051_v19, 9 }
 0x12c   :  { %2786 = vmatmul.msk.bf16.gmra.mxu2 %vm214_vm0, %v4038_v41  ;;  %v4057_v16 = vpack.c.b16 %v4578_v9, %v4577_v37  ;;  %736 = vst [vmem:[#allocation2 + $0x90] sm:$0xf] %v735_v14  ;;  %v1176_v24 = vunpack.c.l.b16 %v774_v46  ;;  %v2827_v2 = vrot.slane %v774_v46, 9  ;;  %v775_v18 = vld [vmem:[#allocation2 + $0x8c] sm:$0x1]  ;;  %v1002_v63 = vshrl.u32 %v774_v46, 16 }
 0x12d   :  { %739 = vst [vmem:[#allocation2 + $0x94] sm:$0x1] %v738_v59  ;;  %v1363_v8 = vrot.slane %v775_v18, 5  ;;  %v1005_v35 = vshll.u32 %v774_v46, 16  ;;  %v995_v56 = vrot.slane %v994_v43, 4  ;;  %v1011_v31 = vshll.u32 %v775_v18, 16  ;;  %2251 = vmatpush.bf16.msra.mxu2 %v3132_v58 }
 0x12e   :  { %v4063_v11 = vpack.c.b16 %v1176_v24, %v1175_v34  ;;  %v1004_v37 = vrot.slane %v1002_v63, 4  ;;  %v1388_v26 = vunpack.c.l.b16 %v1360_v38  ;;  %v999_v59 = vrot.slane %v997_v0, 5 }
 0x12f   :  { %v1364_v14 = vsel %vm3547_vm10, %v2827_v2, %v1363_v8  ;;  %v1007_v9 = vrot.slane %v1005_v35, 5  ;;  %v4579_v34 = vunpack.c.l.b16 %v3870_v39  ;;  %v4580_v43 = vunpack.c.l.b16 %v3942_v51 }
 0x130   :  { %v1389_v27 = vunpack.c.l.b16 %v1364_v14  ;;  %v2197_v2 = vrot.slane %v4065_v3, 5  ;;  %v1000_v38 = vsel %vm3561_vm13, %v995_v56, %v999_v59  ;;  %v1013_v35 = vrot.slane %v1011_v31, 5 }
 0x131   :  { %2811 = vmatmul.msk.bf16.gmra.mxu3 %vm214_vm0, %v4063_v11  ;;  %v1008_v46 = vor.u32 %v1007_v9, %v1004_v37  ;;  %v4076_v57 = vpack.c.b16 %v4580_v43, %v4579_v34  ;;  %v4094_v9 = vunpack.c.l.b16 %v1000_v38  ;;  %v4582_v31 = vunpack.c.l.b16 %v3950_v13 }
 0x132   :  { %v4079_v8 = vpack.c.b16 %v1389_v27, %v1388_v26  ;;  %v2198_v0 = vsel %vm3547_vm10, %v3022_v6, %v2197_v2  ;;  %v4102_v6 = vpop.f32.mrf.mxu0 }
 0x133   :  { %v4081_v18 = vld [vmem:[#allocation2 + $0x90] sm:$0xf]  ;;  %v1009_v63 = vrot.slane %v1008_v46, 4  ;;  %v2212_v51 = vunpack.c.l.b16 %v2198_v0  ;;  %4583 = vst [vmem:[#allocation36_spill] sm:$0xff] %v4102_v6 }
 0x134   :  { %4581 = vst [vmem:[#allocation35_spill] sm:$0xff] %v4079_v8  ;;  %v4539_v39 = vunpack.c.l.b16 %v4081_v18 }
 0x135   :  { %v1014_v14 = vsel %vm3561_vm13, %v1009_v63, %v1013_v35  ;;  %v4100_v59 = vpack.c.b16 %v2212_v51, %v4582_v31  ;;  %v4584_v63 = vpack.c.b16 %v3617_v60, %v3587_v62  ;;  %v1660_v35 = vshrl.u32 %v4081_v18, 16  ;;  %v4137_v60 = vld [vmem:[#allocation2 + $0x98] sm:$0xf] }
 0x136   :  { %2859 = vmatmul.msk.bf16.gmra.mxu0 %vm214_vm0, %v4079_v8  ;;  %v1531_v37 = vpack.c.b16 %v4539_v39, %v1176_v24  ;;  %v4096_v56 = vunpack.c.l.b16 %v1014_v14  ;;  %v4117_v24 = vpack.c.b16 %v1388_v26, %v1387_v49  ;;  %v777_v49 = vld [vmem:[#allocation2 + $0x94] sm:$0x1]  ;;  %v4139_v14 = vld [vmem:[#allocation2 + $0x9c] sm:$0x1] }
 0x137   :  { %v1813_v26 = vrot.slane %v777_v49, 5  ;;  %v1669_v2 = vshll.u32 %v777_v49, 16 }
 0x138   :  { %v4109_v34 = vpack.c.b16 %v4096_v56, %v4094_v9 }
 0x139   :  { %2891 = vmatmul.msk.bf16.gmra.mxu1 %vm214_vm0, %v1531_v37  ;;  %v1662_v37 = vrot.slane %v1660_v35, 4  ;;  %v1671_v8 = vrot.slane %v1669_v2, 5 }
 0x13c   :  { %2787 = vmatmul.msk.bf16.gmra.mxu2 %vm214_vm0, %v4109_v34 }
 0x140   :  { %v1455_v13 = vpop.f32.mrf.mxu0 }
 0x141   :  { %2950 = vmatmul.msk.bf16.vlgmr.msrb.gmra.mxu3 %vm214_vm0, %v3599_v25 }
 0x142   :  { %v1242_v43 = vpop.f32.mrf.mxu3 }
 0x144   :  { %v1589_v31 = vpop.f32.mrf.mxu1 }
 0x146   :  { %2982 = vmatmul.msk.bf16.vlgmr.msra.gmra.mxu0 %vm214_vm0, %v3605_v44  ;;  %v2925_v44 = vrot.slane %v4081_v18, 9 }
 0x148   :  { %v1457_v38 = vpop.f32.mrf.mxu0  ;;  %v1814_v62 = vsel %vm3547_vm10, %v2925_v44, %v1813_v26  ;;  %v2201_v44 = vrot.slane %v4139_v14, 5 }
 0x149   :  { %3014 = vmatmul.msk.bf16.vlgmr.msra.gmra.mxu1 %vm214_vm0, %v3653_v55  ;;  %v1663_v55 = vshll.u32 %v4081_v18, 16 }
 0x14a   :  { %v1244_v25 = vpop.f32.mrf.mxu3 }
 0x14b   :  { %v1665_v39 = vrot.slane %v1663_v55, 5 }
 0x14c   :  { %2916 = vmatmul.msk.bf16.vlgmr.msrb.gmra.mxu2 %vm214_vm0, %v4584_v63  ;;  %v1105_v0 = vpop.f32.mrf.mxu2  ;;  %v1825_v63 = vunpack.c.l.b16 %v1814_v62  ;;  %v1591_v2 = vpop.f32.mrf.mxu1 }
 0x14d   :  { %v1243_v51 = vadd.f32 %v1242_v43, %v1105_v0  ;;  %v1666_v43 = vor.u32 %v1665_v39, %v1662_v37  ;;  %v3023_v0 = vrot.slane %v4137_v60, 9  ;;  %v2058_v37 = vshrl.u32 %v4051_v19, 16 }
 0x14e   :  { %v4143_v30 = vpack.c.b16 %v1825_v63, %v1389_v27 }
 0x14f   :  { %v1495_v46 = vadd.f32 %v1455_v13, %v1243_v51  ;;  %v1667_v6 = vrot.slane %v1666_v43, 4  ;;  %v2202_v35 = vsel %vm3547_vm10, %v3023_v0, %v2201_v44  ;;  %v2060_v44 = vrot.slane %v2058_v37, 4 }
 0x150   :  { %v1460_v58 = vpop.f32.mrf.mxu0  ;;  %v2213_v13 = vunpack.c.l.b16 %v2202_v35 }
 0x151   :  { %2951 = vmatmul.msk.bf16.gmra.mxu3 %vm214_vm0, %v3667_v12  ;;  %v1672_v12 = vsel %vm3561_vm13, %v1667_v6, %v1671_v8 }
 0x152   :  { %v1247_v26 = vpop.f32.mrf.mxu3  ;;  %v4153_v39 = vunpack.c.l.b16 %v1672_v12  ;;  %v4155_v55 = vpack.c.b16 %v2213_v13, %v1825_v63 }
 0x154   :  { %v1107_v49 = vpop.f32.mrf.mxu2  ;;  %v1691_v48 = vpack.c.b16 %v4153_v39, %v4096_v56  ;;  %v1594_v43 = vpop.f32.mrf.mxu1 }
 0x155   :  { %v1245_v27 = vadd.f32 %v1244_v25, %v1107_v49 }
 0x156   :  { %2983 = vmatmul.msk.bf16.gmra.mxu0 %vm214_vm0, %v3669_v21  ;;  %v4585_v21 = vpack.c.b16 %v3681_v40, %v3646_v33 }
 0x157   :  { %v1496_v51 = vadd.f32 %v1457_v38, %v1245_v27  ;;  %v2061_v38 = vshll.u32 %v4051_v19, 16 }
 0x158   :  { %v1462_v62 = vpop.f32.mrf.mxu0 }
 0x159   :  { %3015 = vmatmul.msk.bf16.gmra.mxu1 %vm214_vm0, %v3718_v53  ;;  %v2063_v35 = vrot.slane %v2061_v38, 5 }
 0x15a   :  { %v1249_v8 = vpop.f32.mrf.mxu3 }
 0x15b   :  { %v2064_v13 = vor.u32 %v2063_v35, %v2060_v44 }
 0x15c   :  { %2917 = vmatmul.msk.bf16.gmra.mxu2 %vm214_vm0, %v4585_v21 }
 0x15d   :  { %v1110_v6 = vpop.f32.mrf.mxu2  ;;  %v2065_v21 = vrot.slane %v2064_v13, 4 }
 0x15e   :  { %v1248_v25 = vadd.f32 %v1247_v26, %v1110_v6  ;;  %v2067_v26 = vshll.u32 %v4065_v3, 16  ;;  %v1596_v3 = vpop.f32.mrf.mxu1 }
 0x160   :  { %v1497_v53 = vadd.f32 %v1460_v58, %v1248_v25  ;;  %v1465_v63 = vpop.f32.mrf.mxu0  ;;  %v4586_v58 = vpack.c.b16 %v3774_v17, %v3707_v32  ;;  %v4587_v25 = vunpack.c.l.b16 %v3761_v52 }
 0x161   :  { %2952 = vmatmul.msk.bf16.gmra.mxu3 %vm214_vm0, %v3832_v45  ;;  %v4174_v45 = vadd.f32 %v1589_v31, %v1495_v46  ;;  %v4188_v31 = vadd.f32 %v1591_v2, %v1496_v51  ;;  %v4588_v51 = vpack.c.b16 %v4034_v22, %v3776_v54 }
 0x162   :  { %v1252_v0 = vpop.f32.mrf.mxu3 }
 0x165   :  { %v1112_v33 = vpop.f32.mrf.mxu2 }
 0x166   :  { %2984 = vmatmul.msk.bf16.gmra.mxu0 %vm214_vm0, %v3731_v29  ;;  %v1250_v40 = vadd.f32 %v1249_v8, %v1112_v33  ;;  %v2069_v29 = vrot.slane %v2067_v26, 5  ;;  %v3131_v8 = vld [vmem:[%s4522_s3 + $0x108] sm:$0xff] }
 0x167   :  { %2252 = vmatpush.bf16.msra.mxu2 %v3131_v8  ;;  %v3130_v8 = vld [vmem:[%s4522_s3 + $0x100] sm:$0xff] }
 0x168   :  { %v1498_v49 = vadd.f32 %v1462_v62, %v1250_v40  ;;  %v1467_v12 = vpop.f32.mrf.mxu0  ;;  %v2070_v46 = vsel %vm3561_vm13, %v2065_v21, %v2069_v29 }
 0x169   :  { %3016 = vmatmul.msk.bf16.gmra.mxu1 %vm214_vm0, %v3788_v10  ;;  %v1958_v10 = vunpack.c.l.b16 %v4051_v19  ;;  %v2094_v38 = vunpack.c.l.b16 %v2070_v46 }
 0x16a   :  { %v1254_v27 = vpop.f32.mrf.mxu3 }
 0x16b   :  { %v1960_v37 = vpack.c.b16 %v1958_v10, %v4587_v25  ;;  %v2096_v19 = vpack.c.b16 %v2094_v38, %v4034_v22  ;;  %2253 = vmatpush.bf16.msra.mxu2 %v3130_v8 }
 0x16c   :  { %2918 = vmatmul.msk.bf16.gmra.mxu2 %vm214_vm0, %v4586_v58 }
 0x16d   :  { %v1115_v6 = vpop.f32.mrf.mxu2 }
 0x16e   :  { %v1253_v62 = vadd.f32 %v1252_v0, %v1115_v6  ;;  %v1599_v0 = vpop.f32.mrf.mxu1 }
 0x170   :  { %v1499_v32 = vadd.f32 %v1465_v63, %v1253_v62  ;;  %v1470_v17 = vpop.f32.mrf.mxu0  ;;  %v4195_v63 = vadd.f32 %v1594_v43, %v1497_v53 }
 0x171   :  { %2953 = vmatmul.msk.bf16.gmra.mxu3 %vm214_vm0, %v4006_v5 }
 0x172   :  { %v1257_v44 = vpop.f32.mrf.mxu3  ;;  %v4211_v43 = vadd.f32 %v1599_v0, %v1499_v32 }
 0x175   :  { %v1117_v35 = vpop.f32.mrf.mxu2 }
 0x176   :  { %2985 = vmatmul.msk.bf16.gmra.mxu0 %vm214_vm0, %v1960_v37  ;;  %v1255_v33 = vadd.f32 %v1254_v27, %v1117_v35  ;;  %v1601_v26 = vpop.f32.mrf.mxu1  ;;  %v4203_v27 = vadd.f32 %v1596_v3, %v1498_v49  ;;  %v2075_v35 = vshll.u32 %v4137_v60, 16 }
 0x178   :  { %v1500_v40 = vadd.f32 %v1467_v12, %v1255_v33  ;;  %v1472_v5 = vpop.f32.mrf.mxu0 }
 0x179   :  { %3017 = vmatmul.msk.bf16.gmra.mxu1 %vm214_vm0, %v2096_v19 }
 0x17a   :  { %v1259_v52 = vpop.f32.mrf.mxu3 }
 0x17c   :  { %2919 = vmatmul.msk.bf16.gmra.mxu2 %vm214_vm0, %v4588_v51  ;;  %v2081_v51 = vshll.u32 %v4139_v14, 16 }
 0x17d   :  { %v1120_v2 = vpop.f32.mrf.mxu2 }
 0x17e   :  { %v1258_v13 = vadd.f32 %v1257_v44, %v1120_v2  ;;  %v1604_v29 = vpop.f32.mrf.mxu1  ;;  %v2072_v44 = vshrl.u32 %v4137_v60, 16 }
 0x180   :  { %v1501_v58 = vadd.f32 %v1470_v17, %v1258_v13  ;;  %v4590_v17 = vpack.c.b16 %v4026_v42, %v3920_v7  ;;  %v2074_v0 = vrot.slane %v2072_v44, 4  ;;  %v2077_v7 = vrot.slane %v2075_v35, 5 }
 0x181   :  { %2954 = vmatmul.msk.bf16.gmra.mxu3 %vm214_vm0, %v4057_v16  ;;  %v4205_v21 = vpop.f32.mrf.mxu0  ;;  %v4589_v16 = vpack.c.b16 %v3905_v47, %v3836_v28 }
 0x182   :  { %v4234_v37 = vadd.f32 %v1604_v29, %v1501_v58  ;;  %v2083_v58 = vrot.slane %v2081_v51, 5  ;;  %v4592_v29 = vunpack.c.l.b16 %v4081_v18 }
 0x183   :  { %v1262_v12 = vpop.f32.mrf.mxu3 }
 0x185   :  { %v1122_v53 = vpop.f32.mrf.mxu2 }
 0x186   :  { %2986 = vmatmul.msk.bf16.gmra.mxu0 %vm214_vm0, %v3862_v1  ;;  %v1260_v54 = vadd.f32 %v1259_v52, %v1122_v53  ;;  %v1606_v28 = vpop.f32.mrf.mxu1  ;;  %v1959_v53 = vunpack.c.l.b16 %v4137_v60 }
 0x188   :  { %v1502_v22 = vadd.f32 %v1472_v5, %v1260_v54  ;;  %v2078_v5 = vor.u32 %v2077_v7, %v2074_v0 }
 0x189   :  { %3018 = vmatmul.msk.bf16.gmra.mxu1 %vm214_vm0, %v3934_v36  ;;  %v1477_v1 = vpop.f32.mrf.mxu0  ;;  %v4224_v36 = vadd.f32 %v1601_v26, %v1500_v40  ;;  %v4591_v26 = vpack.c.b16 %v4094_v9, %v4031_v20 }
 0x18a   :  { %v4244_v33 = vadd.f32 %v1606_v28, %v1502_v22 }
 0x18b   :  { %v1264_v49 = vpop.f32.mrf.mxu3 }
 0x18c   :  { %2920 = vmatmul.msk.bf16.gmra.mxu2 %vm214_vm0, %v4589_v16  ;;  %v1961_v16 = vpack.c.b16 %v1959_v53, %v4592_v29 }
 0x18d   :  { %v1125_v3 = vpop.f32.mrf.mxu2 }
 0x18e   :  { %v4220_v6 = vadd.f32 %v1262_v12, %v1125_v3  ;;  %v4236_v38 = vpop.f32.mrf.mxu1 }
 0x191   :  { %2955 = vmatmul.msk.bf16.gmra.mxu3 %vm214_vm0, %v4076_v57 }
 0x193   :  { %v1267_v10 = vpop.f32.mrf.mxu3  ;;  %v1480_v47 = vpop.f32.mrf.mxu0 }
 0x195   :  { %v1127_v62 = vpop.f32.mrf.mxu2 }
 0x196   :  { %2987 = vmatmul.msk.bf16.gmra.mxu0 %vm214_vm0, %v3976_v23  ;;  %v1265_v46 = vadd.f32 %v1264_v49, %v1127_v62  ;;  %v1611_v2 = vpop.f32.mrf.mxu1 }
 0x198   :  { %v1504_v32 = vadd.f32 %v1477_v1, %v1265_v46 }
 0x199   :  { %3019 = vmatmul.msk.bf16.gmra.mxu1 %vm214_vm0, %v4038_v41 }
 0x19a   :  { %v1638_v1 = vadd.f32 %v1611_v2, %v1504_v32  ;;  %v3137_v32 = vld [vmem:[%s4524_s5 + $0x18] sm:$0xff] }
 0x19b   :  { %v1269_v57 = vpop.f32.mrf.mxu3  ;;  %v1482_v19 = vpop.f32.mrf.mxu0  ;;  %2419 = vmatpush.bf16.msra.mxu3 %v3137_v32 }
 0x19c   :  { %2921 = vmatmul.msk.bf16.gmra.mxu2 %vm214_vm0, %v4590_v17 }
 0x19d   :  { %v1130_v25 = vpop.f32.mrf.mxu2 }
 0x19e   :  { %v1268_v23 = vadd.f32 %v1267_v10, %v1130_v25  ;;  %v1614_v9 = vpop.f32.mrf.mxu1 }
 0x1a0   :  { %v1505_v41 = vadd.f32 %v1480_v47, %v1268_v23 }
 0x1a1   :  { %2956 = vmatmul.msk.bf16.gmra.mxu3 %vm214_vm0, %v4117_v24 }
 0x1a2   :  { %v1639_v47 = vadd.f32 %v1614_v9, %v1505_v41  ;;  %v4595_v9 = vld [vmem:[#allocation35_spill] sm:$0xff] }
 0x1a3   :  { %v1485_v24 = vpop.f32.mrf.mxu0 }
 0x1a4   :  { %v1272_v52 = vpop.f32.mrf.mxu3 }
 0x1a5   :  { %v1132_v42 = vpop.f32.mrf.mxu2 }
 0x1a6   :  { %2988 = vmatmul.msk.bf16.gmra.mxu0 %vm214_vm0, %v4063_v11  ;;  %v1270_v40 = vadd.f32 %v1269_v57, %v1132_v42  ;;  %v2079_v11 = vrot.slane %v2078_v5, 4  ;;  %v1616_v18 = vpop.f32.mrf.mxu1 }
 0x1a8   :  { %v1506_v13 = vadd.f32 %v1482_v19, %v1270_v40  ;;  %v2084_v14 = vsel %vm3561_vm13, %v2079_v11, %v2083_v58 }
 0x1a9   :  { %3020 = vmatmul.msk.bf16.gmra.mxu1 %vm214_vm0, %v4109_v34  ;;  %v2095_v20 = vunpack.c.l.b16 %v2084_v14 }
 0x1aa   :  { %v1640_v25 = vadd.f32 %v1616_v18, %v1506_v13 }
 0x1ab   :  { %v1487_v49 = vpop.f32.mrf.mxu0  ;;  %v2097_v60 = vpack.c.b16 %v2095_v20, %v4153_v39 }
 0x1ac   :  { %2922 = vmatmul.msk.bf16.gmra.mxu2 %vm214_vm0, %v4591_v26  ;;  %v1274_v22 = vpop.f32.mrf.mxu3 }
 0x1ae   :  { %v1619_v23 = vpop.f32.mrf.mxu1 }
 0x1af   :  { %v1135_v12 = vpop.f32.mrf.mxu2 }
 0x1b0   :  { %v1273_v54 = vadd.f32 %v1272_v52, %v1135_v12 }
 0x1b1   :  { %2957 = vmatmul.msk.bf16.gmra.mxu3 %vm214_vm0, %v4143_v30 }
 0x1b2   :  { %v1507_v34 = vadd.f32 %v1485_v24, %v1273_v54  ;;  %v4594_v54 = vld [vmem:[#allocation33_spill] sm:$0xff] }
 0x1b3   :  { %v1490_v10 = vpop.f32.mrf.mxu0 }
 0x1b4   :  { %v1277_v30 = vpop.f32.mrf.mxu3  ;;  %v1641_v35 = vadd.f32 %v1619_v23, %v1507_v34 }
 0x1b6   :  { %2989 = vmatmul.msk.bf16.gmra.mxu0 %vm214_vm0, %v1961_v16  ;;  %v1621_v41 = vpop.f32.mrf.mxu1 }
 0x1b7   :  { %v1137_v8 = vpop.f32.mrf.mxu2 }
 0x1b8   :  { %v1275_v3 = vadd.f32 %v1274_v22, %v1137_v8 }
 0x1b9   :  { %3021 = vmatmul.msk.bf16.gmra.mxu1 %vm214_vm0, %v2097_v60 }
 0x1ba   :  { %v1508_v15 = vadd.f32 %v1487_v49, %v1275_v3 }
 0x1bb   :  { %v1492_v56 = vpop.f32.mrf.mxu0 }
 0x1bc   :  { %2923 = vmatmul.msk.bf16.gmra.mxu2 %vm214_vm0, %v1691_v48  ;;  %v1279_v17 = vpop.f32.mrf.mxu3  ;;  %v1642_v7 = vadd.f32 %v1621_v41, %v1508_v15 }
 0x1be   :  { %v1624_v40 = vpop.f32.mrf.mxu1 }
 0x1bf   :  { %v1140_v28 = vpop.f32.mrf.mxu2 }
 0x1c0   :  { %v1278_v62 = vadd.f32 %v1277_v30, %v1140_v28 }
 0x1c2   :  { %v1509_v46 = vadd.f32 %v1490_v10, %v1278_v62 }
 0x1c3   :  { %v2001_v20 = vpop.f32.mrf.mxu0 }
 0x1c4   :  { %v1643_v51 = vadd.f32 %v1624_v40, %v1509_v46 }
 0x1c7   :  { %v1142_v57 = vpop.f32.mrf.mxu2 }
 0x1c8   :  { %v1280_v44 = vadd.f32 %v1279_v17, %v1142_v57 }
 0x1ca   :  { %v1510_v39 = vadd.f32 %v1492_v56, %v1280_v44 }
 0x1cc   :  { %3048 = vmatmul.msk.bf16.vlgmr.msra.gmra.mxu2 %vm214_vm0, %v3626_v4  ;;  %v3136_v4 = vld [vmem:[%s4524_s5 + $0x10] sm:$0xff] }
 0x1cd   :  { %2420 = vmatpush.bf16.msra.mxu3 %v3136_v4 }
 0x1cf   :  { %v1749_v48 = vpop.f32.mrf.mxu2 }
 0x1d0   :  { %v4273_v19 = vadd.f32 %v1749_v48, %v4174_v45  ;;  %v1626_v45 = vpop.f32.mrf.mxu1 }
 0x1d1   :  { %v1644_v13 = vadd.f32 %v1626_v45, %v1510_v39 }
 0x1d7   :  { %v1751_v0 = vpop.f32.mrf.mxu2 }
 0x1d8   :  { %v1790_v42 = vadd.f32 %v1751_v0, %v4188_v31  ;;  %v4593_v31 = vld [vmem:[#allocation28_spill] sm:$0xff]  ;;  %v2137_v49 = vpop.f32.mrf.mxu1 }
 0x1dc   :  { %3049 = vmatmul.msk.bf16.gmra.mxu2 %vm214_vm0, %v3690_v50 }
 0x1df   :  { %v1754_v5 = vpop.f32.mrf.mxu2 }
 0x1e0   :  { %v4279_v52 = vadd.f32 %v1754_v5, %v4195_v63  ;;  %v2139_v30 = vpop.f32.mrf.mxu1 }
 0x1e7   :  { %v1756_v2 = vpop.f32.mrf.mxu2 }
 0x1e8   :  { %v4285_v24 = vadd.f32 %v1756_v2, %v4203_v27  ;;  %v3135_v27 = vld [vmem:[%s4524_s5 + $0x8] sm:$0xff]  ;;  %v2142_v62 = vpop.f32.mrf.mxu1 }
 0x1e9   :  { %2421 = vmatpush.bf16.msra.mxu3 %v3135_v27 }
 0x1ec   :  { %3050 = vmatmul.msk.bf16.gmra.mxu2 %vm214_vm0, %v4593_v31 }
 0x1ef   :  { %v1759_v50 = vpop.f32.mrf.mxu2 }
 0x1f0   :  { %v4290_v26 = vadd.f32 %v1759_v50, %v4211_v43  ;;  %v2144_v23 = vpop.f32.mrf.mxu1 }
 0x1f7   :  { %v1761_v63 = vpop.f32.mrf.mxu2 }
 0x1f8   :  { %v4293_v11 = vadd.f32 %v1761_v63, %v4224_v36  ;;  %v1503_v36 = vadd.f32 %v4205_v21, %v4220_v6  ;;  %v3134_v21 = vld [vmem:[%s4524_s5] sm:$0xff]  ;;  %v1891_v6 = vpop.f32.mrf.mxu3  ;;  %v2147_v5 = vpop.f32.mrf.mxu1 }
 0x1f9   :  { %2422 = vmatpush.bf16.msra.mxu3 %v3134_v21 }
 0x1fc   :  { %3051 = vmatmul.msk.bf16.gmra.mxu2 %vm214_vm0, %v4100_v59  ;;  %v1637_v59 = vadd.f32 %v4236_v38, %v1503_v36 }
 0x1ff   :  { %v1764_v58 = vpop.f32.mrf.mxu2 }
 0x200   :  { %v4298_v12 = vadd.f32 %v1764_v58, %v4234_v37  ;;  %v2149_v36 = vpop.f32.mrf.mxu1 }
 0x207   :  { %v1766_v53 = vpop.f32.mrf.mxu2 }
 0x208   :  { %v4304_v43 = vadd.f32 %v1766_v53, %v4244_v33 }
 0x20c   :  { %3052 = vmatmul.msk.bf16.gmra.mxu2 %vm214_vm0, %v4594_v54 }
 0x20f   :  { %v1769_v14 = vpop.f32.mrf.mxu2 }
 0x210   :  { %v4311_v37 = vadd.f32 %v1769_v14, %v1637_v59 }
 0x217   :  { %v1771_v34 = vpop.f32.mrf.mxu2 }
 0x218   :  { %v4313_v22 = vadd.f32 %v1771_v34, %v1638_v1  ;;  %v2003_v1 = vpop.f32.mrf.mxu0 }
 0x21c   :  { %3053 = vmatmul.msk.bf16.gmra.mxu2 %vm214_vm0, %v4012_v61  ;;  %v1893_v61 = vpop.f32.mrf.mxu3 }
 0x21d   :  { %v1932_v44 = vadd.f32 %v1893_v61, %v1790_v42 }
 0x21f   :  { %v1774_v29 = vpop.f32.mrf.mxu2  ;;  %v2042_v41 = vadd.f32 %v2003_v1, %v1932_v44 }
 0x220   :  { %v4317_v33 = vadd.f32 %v1774_v29, %v1639_v47  ;;  %v2006_v10 = vpop.f32.mrf.mxu0 }
 0x221   :  { %v2178_v40 = vadd.f32 %v2139_v30, %v2042_v41 }
 0x224   :  { %v1896_v18 = vpop.f32.mrf.mxu3 }
 0x227   :  { %v1776_v16 = vpop.f32.mrf.mxu2 }
 0x228   :  { %v4322_v38 = vadd.f32 %v1776_v16, %v1640_v25  ;;  %v2008_v57 = vpop.f32.mrf.mxu0  ;;  %v1931_v25 = vadd.f32 %v1891_v6, %v4273_v19  ;;  %v1933_v19 = vadd.f32 %v1896_v18, %v4279_v52 }
 0x22a   :  { %v2041_v56 = vadd.f32 %v2001_v20, %v1931_v25  ;;  %v2043_v27 = vadd.f32 %v2006_v10, %v1933_v19 }
 0x22c   :  { %3054 = vmatmul.msk.bf16.gmra.mxu2 %vm214_vm0, %v4595_v9  ;;  %v1898_v46 = vpop.f32.mrf.mxu3  ;;  %v2179_v54 = vadd.f32 %v2142_v62, %v2043_v27  ;;  %v2152_v9 = vpop.f32.mrf.mxu1 }
 0x22d   :  { %v1934_v63 = vadd.f32 %v1898_v46, %v4285_v24 }
 0x22f   :  { %v1779_v8 = vpop.f32.mrf.mxu2  ;;  %v2044_v59 = vadd.f32 %v2008_v57, %v1934_v63 }
 0x230   :  { %v4326_v60 = vadd.f32 %v1779_v8, %v1641_v35  ;;  %v2177_v35 = vadd.f32 %v2137_v49, %v2041_v56 }
 0x231   :  { %v2180_v29 = vadd.f32 %v2144_v23, %v2044_v59 }
 0x234   :  { %v1901_v39 = vpop.f32.mrf.mxu3 }
 0x235   :  { %v1935_v20 = vadd.f32 %v1901_v39, %v4290_v26 }
 0x237   :  { %v1781_v3 = vpop.f32.mrf.mxu2 }
 0x238   :  { %v4328_v15 = vadd.f32 %v1781_v3, %v1642_v7  ;;  %v4337_v7 = vld [vmem:[#allocation8] ss:$0 sm:$0xff] }
 0x23c   :  { %3055 = vmatmul.msk.bf16.gmra.mxu2 %vm214_vm0, %v4155_v55  ;;  %v2011_v55 = vpop.f32.mrf.mxu0  ;;  %v1903_v2 = vpop.f32.mrf.mxu3 }
 0x23d   :  { %v1936_v1 = vadd.f32 %v1903_v2, %v4293_v11  ;;  %v2045_v30 = vadd.f32 %v2011_v55, %v1935_v20 }
 0x23f   :  { %v1784_v28 = vpop.f32.mrf.mxu2 }
 0x240   :  { %v4332_v47 = vadd.f32 %v1784_v28, %v1643_v51  ;;  %v2181_v28 = vadd.f32 %v2147_v5, %v2045_v30 }
 0x244   :  { %v2013_v50 = vpop.f32.mrf.mxu0  ;;  %v1906_v14 = vpop.f32.mrf.mxu3 }
 0x245   :  { %v2046_v62 = vadd.f32 %v2013_v50, %v1936_v1  ;;  %v1937_v56 = vadd.f32 %v1906_v14, %v4298_v12 }
 0x247   :  { %v1786_v32 = vpop.f32.mrf.mxu2  ;;  %v2182_v57 = vadd.f32 %v2149_v36, %v2046_v62 }
 0x248   :  { %v4334_v17 = vadd.f32 %v1786_v32, %v1644_v13  ;;  %v2154_v32 = vpop.f32.mrf.mxu1 }
 0x24c   :  { %v2016_v21 = vpop.f32.mrf.mxu0  ;;  %v1908_v61 = vpop.f32.mrf.mxu3 }
 0x24d   :  { %v1938_v41 = vadd.f32 %v1908_v61, %v4304_v43 }
 0x24f   :  { %v2255_v48 = vpop.f32.mrf.mxu2 }
 0x250   :  { %v2295_v0 = vadd.f32 %v2255_v48, %v2177_v35 }
 0x252   :  { %v2315_v4 = vadd.f32 %v4337_v7, %v2295_v0  ;;  %v2047_v0 = vadd.f32 %v2016_v21, %v1937_v56 }
 0x254   :  { %v2331_v13 = vmax.f32 %v2315_v4, 0.0  ;;  %v2018_v10 = vpop.f32.mrf.mxu0  ;;  %v1911_v26 = vpop.f32.mrf.mxu3  ;;  %v2183_v4 = vadd.f32 %v2152_v9, %v2047_v0 }
 0x255   :  { %v1939_v63 = vadd.f32 %v1911_v26, %v4311_v37 }
 0x257   :  { %v2257_v51 = vpop.f32.mrf.mxu2 }
 0x258   :  { %v2296_v45 = vadd.f32 %v2257_v51, %v2178_v40  ;;  %v2157_v40 = vpop.f32.mrf.mxu1 }
 0x25a   :  { %v2316_v42 = vadd.f32 %v4337_v7, %v2296_v45  ;;  %v2048_v45 = vadd.f32 %v2018_v10, %v1938_v41 }
 0x25c   :  { %v2332_v31 = vmax.f32 %v2316_v42, 0.0  ;;  %v2021_v39 = vpop.f32.mrf.mxu0  ;;  %v1913_v51 = vpop.f32.mrf.mxu3  ;;  %v2184_v42 = vadd.f32 %v2154_v32, %v2048_v45 }
 0x25d   :  { %v1940_v36 = vadd.f32 %v1913_v51, %v4313_v22  ;;  %v2049_v59 = vadd.f32 %v2021_v39, %v1939_v63 }
 0x25e   :  { %v2347_v58 = vpack.c.bf16 %v2332_v31, %v2331_v13 }
 0x25f   :  { %v2260_v53 = vpop.f32.mrf.mxu2 }
 0x260   :  { %3072 = vmatmul.msk.bf16.vlgmr.msra.gmra.mxu3 %vm214_vm0, %v2347_v58  ;;  %v2297_v34 = vadd.f32 %v2260_v53, %v2179_v54  ;;  %v2159_v50 = vpop.f32.mrf.mxu1 }
 0x262   :  { %v2317_v6 = vadd.f32 %v4337_v7, %v2297_v34 }
 0x264   :  { %v2333_v49 = vmax.f32 %v2317_v6, 0.0  ;;  %v2023_v19 = vpop.f32.mrf.mxu0  ;;  %v1916_v58 = vpop.f32.mrf.mxu3 }
 0x265   :  { %v2050_v21 = vadd.f32 %v2023_v19, %v1940_v36 }
 0x267   :  { %v2262_v52 = vpop.f32.mrf.mxu2  ;;  %v2186_v20 = vadd.f32 %v2159_v50, %v2050_v21 }
 0x268   :  { %v2298_v16 = vadd.f32 %v2262_v52, %v2180_v29  ;;  %v2185_v29 = vadd.f32 %v2157_v40, %v2049_v59  ;;  %v2162_v52 = vpop.f32.mrf.mxu1 }
 0x26a   :  { %v2318_v24 = vadd.f32 %v4337_v7, %v2298_v16 }
 0x26c   :  { %v2334_v8 = vmax.f32 %v2318_v24, 0.0  ;;  %v2026_v14 = vpop.f32.mrf.mxu0  ;;  %v1918_v16 = vpop.f32.mrf.mxu3 }
 0x26d   :  { %v1942_v30 = vadd.f32 %v1918_v16, %v4322_v38 }
 0x26e   :  { %v2348_v3 = vpack.c.bf16 %v2334_v8, %v2333_v49  ;;  %v1941_v8 = vadd.f32 %v1916_v58, %v4317_v33 }
 0x26f   :  { %v2265_v18 = vpop.f32.mrf.mxu2 }
 0x270   :  { %3073 = vmatmul.msk.bf16.gmra.mxu3 %vm214_vm0, %v2348_v3  ;;  %v2299_v46 = vadd.f32 %v2265_v18, %v2181_v28  ;;  %v2164_v3 = vpop.f32.mrf.mxu1  ;;  %v2051_v10 = vadd.f32 %v2026_v14, %v1941_v8  ;;  %v2513_v8 = vld [vmem:[%s4526_s7 + $0x70] sm:$0xff] }
 0x272   :  { %v2319_v23 = vadd.f32 %v4337_v7, %v2299_v46  ;;  %v2187_v46 = vadd.f32 %v2162_v52, %v2051_v10 }
 0x274   :  { %v2335_v48 = vmax.f32 %v2319_v23, 0.0  ;;  %v2028_v49 = vpop.f32.mrf.mxu0  ;;  %v1921_v28 = vpop.f32.mrf.mxu3 }
 0x275   :  { %v2052_v32 = vadd.f32 %v2028_v49, %v1942_v30  ;;  %v1943_v39 = vadd.f32 %v1921_v28, %v4326_v60  ;;  %v2514_v49 = vld [vmem:[%s4526_s7 + $0x78] sm:$0xff] }
 0x276   :  { %2520 = vmatpush.msrb.mxu0 %v2514_v49 }
 0x277   :  { %v2267_v25 = vpop.f32.mrf.mxu2 }
 0x278   :  { %v2300_v44 = vadd.f32 %v2267_v25, %v2182_v57  ;;  %v2188_v25 = vadd.f32 %v2164_v3, %v2052_v32  ;;  %v2167_v23 = vpop.f32.mrf.mxu1  ;;  %2521 = vmatpush.msrb.mxu0 %v2513_v8  ;;  %v2510_v3 = vld [vmem:[%s4526_s7 + $0x58] sm:$0xff] }
 0x27a   :  { %v2320_v11 = vadd.f32 %v4337_v7, %v2300_v44 }
 0x27c   :  { %v2336_v35 = vmax.f32 %v2320_v11, 0.0  ;;  %v2031_v57 = vpop.f32.mrf.mxu0  ;;  %v1923_v11 = vpop.f32.mrf.mxu3 }
 0x27d   :  { %v2053_v40 = vadd.f32 %v2031_v57, %v1943_v39  ;;  %v2506_v57 = vld [vmem:[%s4526_s7 + $0x38] sm:$0xff] }
 0x27e   :  { %v2349_v55 = vpack.c.bf16 %v2336_v35, %v2335_v48  ;;  %v2502_v39 = vld [vmem:[%s4526_s7 + $0x18] sm:$0xff] }
 0x27f   :  { %v2270_v5 = vpop.f32.mrf.mxu2 }
 0x280   :  { %3074 = vmatmul.msk.bf16.gmra.mxu3 %vm214_vm0, %v2349_v55  ;;  %v2301_v2 = vadd.f32 %v2270_v5, %v2183_v4  ;;  %v1944_v55 = vadd.f32 %v1923_v11, %v4328_v15  ;;  %v2169_v51 = vpop.f32.mrf.mxu1  ;;  %v2189_v4 = vadd.f32 %v2167_v23, %v2053_v40 }
 0x282   :  { %v2321_v13 = vadd.f32 %v4337_v7, %v2301_v2 }
 0x284   :  { %v2337_v27 = vmax.f32 %v2321_v13, 0.0  ;;  %v2033_v41 = vpop.f32.mrf.mxu0  ;;  %v1926_v2 = vpop.f32.mrf.mxu3 }
 0x285   :  { %v2054_v45 = vadd.f32 %v2033_v41, %v1944_v55  ;;  %v1945_v50 = vadd.f32 %v1926_v2, %v4332_v47  ;;  %v3149_v41 = vld [vmem:[#allocation9] ss:$0 sm:$0xff] }
 0x287   :  { %v2272_v12 = vpop.f32.mrf.mxu2 }
 0x288   :  { %v2302_v31 = vadd.f32 %v2272_v12, %v2184_v42  ;;  %v2190_v42 = vadd.f32 %v2169_v51, %v2054_v45  ;;  %v2172_v63 = vpop.f32.mrf.mxu1 }
 0x28a   :  { %v2322_v43 = vadd.f32 %v4337_v7, %v2302_v31 }
 0x28c   :  { %v2338_v53 = vmax.f32 %v2322_v43, 0.0  ;;  %v2036_v12 = vpop.f32.mrf.mxu0 }
 0x28e   :  { %v2350_v54 = vpack.c.bf16 %v2338_v53, %v2337_v27  ;;  %v1928_v27 = vpop.f32.mrf.mxu3 }
 0x28f   :  { %v2275_v34 = vpop.f32.mrf.mxu2  ;;  %v1946_v53 = vadd.f32 %v1928_v27, %v4334_v17  ;;  %v2541_v27 = vld [vmem:[#allocation11] sm:$0xff] }
 0x290   :  { %3075 = vmatmul.msk.bf16.gmra.mxu3 %vm214_vm0, %v2350_v54  ;;  %v2303_v6 = vadd.f32 %v2275_v34, %v2185_v29  ;;  %v2055_v54 = vadd.f32 %v2036_v12, %v1945_v50  ;;  %v2174_v52 = vpop.f32.mrf.mxu1  ;;  %2561 = vmatpush.msrb.mxu1 %v2541_v27 }
 0x292   :  { %v2323_v24 = vadd.f32 %v4337_v7, %v2303_v6  ;;  %v2191_v34 = vadd.f32 %v2172_v63, %v2055_v54 }
 0x294   :  { %v2339_v61 = vmax.f32 %v2323_v24, 0.0  ;;  %v2038_v14 = vpop.f32.mrf.mxu0 }
 0x295   :  { %v2056_v29 = vadd.f32 %v2038_v14, %v1946_v53 }
 0x297   :  { %v2277_v37 = vpop.f32.mrf.mxu2  ;;  %v2192_v6 = vadd.f32 %v2174_v52, %v2056_v29 }
 0x298   :  { %v2304_v9 = vadd.f32 %v2277_v37, %v2186_v20 }
 0x29a   :  { %v2324_v22 = vadd.f32 %v4337_v7, %v2304_v9 }
 0x29c   :  { %v2340_v1 = vmax.f32 %v2324_v22, 0.0  ;;  %v2512_v22 = vld [vmem:[%s4526_s7 + $0x68] sm:$0xff] }
 0x29d   :  { %2522 = vmatpush.msrb.mxu0 %v2512_v22 }
 0x29e   :  { %v2351_v18 = vpack.c.bf16 %v2340_v1, %v2339_v61  ;;  %v2511_v61 = vld [vmem:[%s4526_s7 + $0x60] sm:$0xff] }
 0x29f   :  { %v2280_v62 = vpop.f32.mrf.mxu2  ;;  %2523 = vmatpush.msrb.mxu0 %v2511_v61 }
 0x2a0   :  { %3076 = vmatmul.msk.bf16.gmra.mxu3 %vm214_vm0, %v2351_v18  ;;  %v2305_v26 = vadd.f32 %v2280_v62, %v2187_v46  ;;  %v2509_v18 = vld [vmem:[%s4526_s7 + $0x50] sm:$0xff]  ;;  %v2508_v62 = vld [vmem:[%s4526_s7 + $0x48] sm:$0xff]  ;;  %v2507_v46 = vld [vmem:[%s4526_s7 + $0x40] sm:$0xff] }
 0x2a1   :  { %2524 = vmatpush.msrb.mxu0 %v2510_v3 }
 0x2a2   :  { %v2325_v44 = vadd.f32 %v4337_v7, %v2305_v26 }
 0x2a3   :  { %2525 = vmatpush.msrb.mxu0 %v2509_v18 }
 0x2a4   :  { %v2341_v48 = vmax.f32 %v2325_v44, 0.0 }
 0x2a5   :  { %2526 = vmatpush.msrb.mxu0 %v2508_v62 }
 0x2a7   :  { %v2282_v33 = vpop.f32.mrf.mxu2  ;;  %2527 = vmatpush.msrb.mxu0 %v2507_v46 }
 0x2a8   :  { %v2306_v56 = vadd.f32 %v2282_v33, %v2188_v25  ;;  %v2505_v25 = vld [vmem:[%s4526_s7 + $0x30] sm:$0xff]  ;;  %v2504_v33 = vld [vmem:[%s4526_s7 + $0x28] sm:$0xff] }
 0x2a9   :  { %2528 = vmatpush.msrb.mxu0 %v2506_v57 }
 0x2aa   :  { %v2326_v38 = vadd.f32 %v4337_v7, %v2306_v56  ;;  %v2503_v56 = vld [vmem:[%s4526_s7 + $0x20] sm:$0xff] }
 0x2ab   :  { %2529 = vmatpush.msrb.mxu0 %v2505_v25 }
 0x2ac   :  { %v2342_v35 = vmax.f32 %v2326_v38, 0.0 }
 0x2ad   :  { %2530 = vmatpush.msrb.mxu0 %v2504_v33 }
 0x2ae   :  { %v2352_v0 = vpack.c.bf16 %v2342_v35, %v2341_v48  ;;  %v2501_v48 = vld [vmem:[%s4526_s7 + $0x10] sm:$0xff] }
 0x2af   :  { %v2285_v5 = vpop.f32.mrf.mxu2  ;;  %2531 = vmatpush.msrb.mxu0 %v2503_v56 }
 0x2b0   :  { %3077 = vmatmul.msk.bf16.gmra.mxu3 %vm214_vm0, %v2352_v0  ;;  %v2307_v19 = vadd.f32 %v2285_v5, %v2189_v4 }
 0x2b1   :  { %2532 = vmatpush.msrb.mxu0 %v2502_v39 }
 0x2b2   :  { %v2327_v13 = vadd.f32 %v4337_v7, %v2307_v19 }
 0x2b3   :  { %2533 = vmatpush.msrb.mxu0 %v2501_v48 }
 0x2b4   :  { %v2343_v43 = vmax.f32 %v2327_v13, 0.0  ;;  %v2500_v13 = vld [vmem:[%s4526_s7 + $0x8] sm:$0xff] }
 0x2b5   :  { %2534 = vmatpush.msrb.mxu0 %v2500_v13 }
 0x2b7   :  { %v2287_v60 = vpop.f32.mrf.mxu2 }
 0x2b8   :  { %v2308_v31 = vadd.f32 %v2287_v60, %v2190_v42 }
 0x2ba   :  { %v2328_v15 = vadd.f32 %v4337_v7, %v2308_v31  ;;  %v2499_v31 = vld [vmem:[%s4526_s7] sm:$0xff]  ;;  %s3317_s7 = smov [#allocation12]  }
 0x2bb   :  { %2535 = vmatpush.msrb.mxu0 %v2499_v31  ;;  %s2659_s4 = sshll.u32 %s3317_s7, 4  ;;  %s2660_s4 = int_to_ptr.vmem [resolvable:$true] %s2659_s4 }
 0x2bc   :  { %v2344_v58 = vmax.f32 %v2328_v15, 0.0 }
 0x2be   :  { %v2353_v36 = vpack.c.bf16 %v2344_v58, %v2343_v43 }
 0x2bf   :  { %v2290_v59 = vpop.f32.mrf.mxu2 }
 0x2c0   :  { %3078 = vmatmul.msk.bf16.gmra.mxu3 %vm214_vm0, %v2353_v36  ;;  %v2309_v21 = vadd.f32 %v2290_v59, %v2191_v34  ;;  %v3316_v59 = vmov 64.0  }
 0x2c1   :  { %3150 = vrcp.f32 %v3316_v59 }
 0x2c2   :  { %v2329_v16 = vadd.f32 %v4337_v7, %v2309_v21 }
 0x2c4   :  { %v2345_v24 = vmax.f32 %v2329_v16, 0.0 }
 0x2c7   :  { %v2292_v47 = vpop.f32.mrf.mxu2 }
 0x2c8   :  { %v2310_v20 = vadd.f32 %v2292_v47, %v2192_v6  ;;  %v3151_v47 = vpop.eup %3150 }
 0x2c9   :  { %vm2495_vm14 = vweird.f32 %v3151_v47 }
 0x2ca   :  { %v2330_v37 = vadd.f32 %v4337_v7, %v2310_v20 }
 0x2cc   :  { %v2346_v9 = vmax.f32 %v2330_v37, 0.0 }
 0x2ce   :  { %v2354_v17 = vpack.c.bf16 %v2346_v9, %v2345_v24 }
 0x2d0   :  { %3079 = vmatmul.msk.bf16.gmra.mxu3 %vm214_vm0, %v2354_v17  ;;  %v2491_v17 = vmul.f32 64.0, %v3151_v47  ;;  %vm2542_vm0 = vcmask 64512  }
 0x2e3   :  { %v2424_v7 = vpop.f32.mrf.mxu3 }
 0x2e4   :  { %v4421_v0 = vadd.f32 %v3149_v41, %v2424_v7 }
 0x2eb   :  { %v2426_v1 = vpop.f32.mrf.mxu3 }
 0x2ec   :  { %v4419_v55 = vadd.f32 %v3149_v41, %v2426_v1  ;;  %v2492_v1 = vsub.f32 1.0, %v2491_v17 }
 0x2ee   :  { %v2464_v51 = vadd.f32 %v4419_v55, %v4421_v0 }
 0x2f3   :  { %v2429_v30 = vpop.f32.mrf.mxu3 }
 0x2f4   :  { %v4423_v40 = vadd.f32 %v3149_v41, %v2429_v30 }
 0x2f6   :  { %v2465_v45 = vadd.f32 %v2464_v51, %v4423_v40 }
 0x2fb   :  { %v2431_v10 = vpop.f32.mrf.mxu3 }
 0x2fc   :  { %v4427_v4 = vadd.f32 %v3149_v41, %v2431_v10  ;;  %v2493_v10 = vmul.f32 %v3151_v47, %v2492_v1 }
 0x2fe   :  { %v2466_v19 = vadd.f32 %v2465_v45, %v4427_v4 }
 0x303   :  { %v2434_v28 = vpop.f32.mrf.mxu3 }
 0x304   :  { %v4430_v2 = vadd.f32 %v3149_v41, %v2434_v28 }
 0x306   :  { %v2467_v12 = vadd.f32 %v2466_v19, %v4430_v2 }
 0x30b   :  { %v2436_v32 = vpop.f32.mrf.mxu3 }
 0x30c   :  { %v4433_v42 = vadd.f32 %v3149_v41, %v2436_v32  ;;  %v2494_v32 = vadd.f32 %v3151_v47, %v2493_v10 }
 0x30e   :  { %v2468_v15 = vadd.f32 %v2467_v12, %v4433_v42 }
 0x313   :  { %v2439_v26 = vpop.f32.mrf.mxu3 }
 0x314   :  { %v4436_v60 = vadd.f32 %v3149_v41, %v2439_v26 }
 0x316   :  { %v2469_v43 = vadd.f32 %v2468_v15, %v4436_v60 }
 0x31b   :  { %v2441_v23 = vpop.f32.mrf.mxu3 }
 0x31c   :  { %v4445_v63 = vadd.f32 %v3149_v41, %v2441_v23  ;;  %v2496_v23 = vsel %vm2495_vm14, %v3151_v47, %v2494_v32  ;;  %v4596_v47 = vld [vmem:[#allocation17_spill] sm:$0xff] }
 0x31e   :  { %v2470_v53 = vadd.f32 %v2469_v43, %v4445_v63 }
 0x320   :  { %v2471_v21 = vrot.slane %v2470_v53, 4 }
 0x322   :  { %v2472_v37 = vadd.f32 %v2471_v21, %v2470_v53 }
 0x323   :  { %v2444_v44 = vpop.f32.mrf.mxu3 }
 0x324   :  { %v4451_v36 = vadd.f32 %v3149_v41, %v2444_v44  ;;  %v2473_v22 = vrot.slane %v2472_v37, 2 }
 0x326   :  { %v2474_v30 = vadd.f32 %v2473_v22, %v2472_v37 }
 0x328   :  { %v2475_v62 = vrot.slane %v2474_v30, 1 }
 0x32a   :  { %v2476_v26 = vadd.f32 %v2475_v62, %v2474_v30 }
 0x32b   :  { %v2446_v11 = vpop.f32.mrf.mxu3 }
 0x32c   :  { %v4448_v58 = vadd.f32 %v3149_v41, %v2446_v11  ;;  %v2497_v44 = vmul.f32 %v2496_v23, %v2476_v26  ;;  %v4604_v26 = vld [vmem:[#allocation24_spill] sm:$0xff] }
 0x32e   :  { %v2477_v14 = vadd.f32 %v4448_v58, %v4451_v36 }
 0x333   :  { %v2449_v38 = vpop.f32.mrf.mxu3 }
 0x334   :  { %v4453_v54 = vadd.f32 %v3149_v41, %v2449_v38 }
 0x336   :  { %v2478_v52 = vadd.f32 %v2477_v14, %v4453_v54 }
 0x33b   :  { %v2451_v35 = vpop.f32.mrf.mxu3 }
 0x33c   :  { %v4457_v34 = vadd.f32 %v3149_v41, %v2451_v35 }
 0x33e   :  { %v2479_v16 = vadd.f32 %v2478_v52, %v4457_v34 }
 0x343   :  { %v2454_v5 = vpop.f32.mrf.mxu3 }
 0x344   :  { %v4460_v6 = vadd.f32 %v3149_v41, %v2454_v5 }
 0x346   :  { %v2480_v24 = vadd.f32 %v2479_v16, %v4460_v6  ;;  %v4597_v16 = vld [vmem:[#allocation19_spill] sm:$0xff] }
 0x347   :  { %v251_v37 = vadd.f32 %v4597_v16, %v4596_v47 }
 0x34b   :  { %v2456_v50 = vpop.f32.mrf.mxu3 }
 0x34c   :  { %v4463_v20 = vadd.f32 %v3149_v41, %v2456_v50 }
 0x34e   :  { %v2481_v49 = vadd.f32 %v2480_v24, %v4463_v20 }
 0x353   :  { %v2459_v29 = vpop.f32.mrf.mxu3 }
 0x354   :  { %v4466_v9 = vadd.f32 %v3149_v41, %v2459_v29 }
 0x356   :  { %v2482_v7 = vadd.f32 %v2481_v49, %v4466_v9  ;;  %v4598_v49 = vld [vmem:[#allocation21_spill] sm:$0xff] }
 0x35b   :  { %v2461_v8 = vpop.f32.mrf.mxu3 }
 0x35c   :  { %v4470_v61 = vadd.f32 %v3149_v41, %v2461_v8  ;;  %v256_v8 = vadd.f32 %v4598_v49, %v4596_v47 }
 0x35e   :  { %v2483_v3 = vadd.f32 %v2482_v7, %v4470_v61 }
 0x360   :  { %v2484_v18 = vrot.slane %v2483_v3, 4 }
 0x362   :  { %v2485_v28 = vadd.f32 %v2484_v18, %v2483_v3  ;;  %v4600_v3 = vld [vmem:[#allocation20_spill] sm:$0xff] }
 0x364   :  { %v2486_v46 = vrot.slane %v2485_v28, 2 }
 0x366   :  { %v2487_v57 = vadd.f32 %v2486_v46, %v2485_v28  ;;  %v4602_v28 = vld [vmem:[#allocation22_spill] sm:$0xff]  ;;  %v4603_v46 = vld [vmem:[#allocation25_spill] sm:$0xff] }
 0x368   :  { %v2488_v25 = vrot.slane %v2487_v57, 1 }
 0x36a   :  { %v2489_v33 = vadd.f32 %v2488_v25, %v2487_v57 }
 0x36c   :  { %v2498_v56 = vmul.f32 %v2496_v23, %v2489_v33 }
 0x36e   :  { %v2518_v11 = vsel %vm2517_vm15, %v2498_v56, %v2497_v44 }
 0x36f   :  { %2536 = vmatmul.f32.vlgmr.msrb.gmra.mxu0 %v2518_v11 }
 0x3ec   :  { %v2537_v39 = vpop.f32.mrf.mxu0 }
 0x3ed   :  { %v2540_v38 = vmax.f32 %v2537_v39, 0.0 }
 0x3ef   :  { %3080 = vmatmul.msk.f32.vlgmr.msrb.gmra.mxu1 %vm2542_vm0, %v2540_v38 }
 0x46c   :  { %v2563_v48 = vpop.f32.mrf.mxu1 }
 0x46d   :  { %v3081_v35 = vmul.f32 -1.442695, %v2563_v48  ;;  %v4606_v48 = vld [vmem:[#allocation26_spill] sm:$0xff] }
 0x46f   :  { %3152 = vpow2.f32 %v3081_v35 }
 0x475   :  { %v3153_v41 = vpop.eup %3152 }
 0x476   :  { %v2569_v5 = vadd.f32 1.0, %v3153_v41 }
 0x478   :  { %3154 = vrcp.f32 %v2569_v5  ;;  %v2581_v12 = vand.u32 2147483648, %v2569_v5  ;;  %v2579_v31 = vand.u32 2147483647, %v2569_v5  ;;  %vm2575_vm2 = vweird.f32 %v2569_v5 }
 0x47a   :  { %v2582_v15 = vor.u32 1.1754944e-38, %v2581_v12  ;;  %vm2580_vm4 = vcmp.eq.f32.partialorder %v2579_v31, 8.507059e+37  ;;  %v4608_v12 = vld [vmem:[#allocation29_spill] sm:$0xff] }
 0x47e   :  { %v3155_v51 = vpop.eup %3154 }
 0x47f   :  { %v2571_v45 = vmul.f32 %v3155_v51, %v2569_v5  ;;  %vm2576_vm1 = vweird.f32 %v3155_v51 }
 0x480   :  { %vm2577_vm3 = vmor %vm2575_vm2, %vm2576_vm1 }
 0x481   :  { %v2572_v19 = vsub.f32 1.0, %v2571_v45 }
 0x483   :  { %v2573_v13 = vmul.f32 %v3155_v51, %v2572_v19 }
 0x485   :  { %v2574_v50 = vadd.f32 %v3155_v51, %v2573_v13 }
 0x487   :  { %v2578_v43 = vsel %vm2577_vm3, %v3155_v51, %v2574_v50 }
 0x488   :  { %v2583_v27 = vsel %vm2580_vm4, %v2582_v15, %v2578_v43 }
 0x489   :  { %v2586_v53 = vrot.slane %v2583_v27, 1  ;;  %v2587_v59 = vperm.slane %v2583_v27, 0  ;;  %v4610_v27 = vld [vmem:[#allocation31_spill] sm:$0xff] }
 0x48b   :  { %v2591_v14 = vmul.f32 %v2587_v59, %v4421_v0  ;;  %v2592_v29 = vmul.f32 %v2587_v59, %v4419_v55  ;;  %v2593_v21 = vmul.f32 %v2587_v59, %v4423_v40  ;;  %v2594_v52 = vmul.f32 %v2587_v59, %v4427_v4  ;;  %v4599_v0 = vld [vmem:[#allocation18_spill] sm:$0xff]  ;;  %v4601_v4 = vld [vmem:[#allocation23_spill] sm:$0xff] }
 0x48c   :  { %v2588_v24 = vperm.slane %v2586_v53, 0  ;;  %v2595_v17 = vmul.f32 %v2587_v59, %v4430_v2  ;;  %v2596_v22 = vmul.f32 %v2587_v59, %v4433_v42  ;;  %v2597_v7 = vmul.f32 %v2587_v59, %v4436_v60 }
 0x48d   :  { %v2607_v1 = vadd.f32 %v2591_v14, %v4599_v0  ;;  %v2608_v55 = vadd.f32 %v2592_v29, %v251_v37  ;;  %v2609_v40 = vadd.f32 %v2593_v21, %v4600_v3  ;;  %v261_v30 = vadd.f32 %v4601_v4, %v4596_v47  ;;  %v4612_v21 = vld [vmem:[#allocation34_spill] sm:$0xff] }
 0x48e   :  { %v2598_v18 = vmul.f32 %v2587_v59, %v4445_v63  ;;  %v2610_v10 = vadd.f32 %v2594_v52, %v256_v8  ;;  %v2599_v2 = vmul.f32 %v2588_v24, %v4451_v36  ;;  %v2611_v62 = vadd.f32 %v2595_v17, %v4602_v28  ;;  %v4605_v63 = vld [vmem:[#allocation27_spill] sm:$0xff]  ;;  %v4611_v59 = vld [vmem:[#allocation36_spill] sm:$0xff] }
 0x48f   :  { %v266_v42 = vadd.f32 %v4603_v46, %v4596_v47  ;;  %v2600_v60 = vmul.f32 %v2588_v24, %v4448_v58  ;;  %v2601_v32 = vmul.f32 %v2588_v24, %v4453_v54  ;;  %v2612_v57 = vadd.f32 %v2596_v22, %v261_v30  ;;  %v4607_v54 = vld [vmem:[#allocation30_spill] sm:$0xff] }
 0x490   :  { %v2613_v25 = vadd.f32 %v2597_v7, %v4604_v26  ;;  %v2623_v23 = vmax.f32 %v2607_v1, 0.0  ;;  %v2624_v33 = vmax.f32 %v2608_v55, 0.0  ;;  %v2625_v44 = vmax.f32 %v2609_v40, 0.0 }
 0x491   :  { %v271_v56 = vadd.f32 %v4605_v63, %v4596_v47  ;;  %v2602_v36 = vmul.f32 %v2588_v24, %v4457_v34  ;;  %v2614_v11 = vadd.f32 %v2598_v18, %v266_v42  ;;  %v2626_v39 = vmax.f32 %v2610_v10, 0.0 }
 0x492   :  { %v2603_v38 = vmul.f32 %v2588_v24, %v4460_v6  ;;  %v2615_v35 = vadd.f32 %v2599_v2, %v4606_v48  ;;  %v2627_v58 = vmax.f32 %v2611_v62, 0.0  ;;  %2639 = vst [vmem:[#allocation12] sm:$0xff] %v2623_v23  ;;  %v276_v41 = vadd.f32 %v4607_v54, %v4596_v47  ;;  %v4609_v6 = vld [vmem:[#allocation32_spill] sm:$0xff] }
 0x493   :  { %v2604_v5 = vmul.f32 %v2588_v24, %v4463_v20  ;;  %v2616_v51 = vadd.f32 %v2600_v60, %v271_v56  ;;  %v2628_v45 = vmax.f32 %v2612_v57, 0.0  ;;  %2640 = vst [vmem:[#allocation12 + $0x8] sm:$0xff] %v2624_v33  ;;  %v2605_v19 = vmul.f32 %v2588_v24, %v4466_v9 }
 0x494   :  { %v2617_v34 = vadd.f32 %v2601_v32, %v4608_v12  ;;  %v2629_v13 = vmax.f32 %v2613_v25, 0.0  ;;  %2641 = vst [vmem:[#allocation12 + $0x10] sm:$0xff] %v2625_v44  ;;  %v281_v31 = vadd.f32 %v4609_v6, %v4596_v47  ;;  %v2606_v50 = vmul.f32 %v2588_v24, %v4470_v61 }
 0x495   :  { %v2618_v15 = vadd.f32 %v2602_v36, %v276_v41  ;;  %v2630_v43 = vmax.f32 %v2614_v11, 0.0  ;;  %2642 = vst [vmem:[#allocation12 + $0x18] sm:$0xff] %v2626_v39  ;;  %v2619_v53 = vadd.f32 %v2603_v38, %v4610_v27  ;;  %v2631_v20 = vmax.f32 %v2615_v35, 0.0 }
 0x496   :  { %2643 = vst [vmem:[#allocation12 + $0x20] sm:$0xff] %v2627_v58  ;;  %v286_v14 = vadd.f32 %v4611_v59, %v4596_v47  ;;  %v2620_v9 = vadd.f32 %v2604_v5, %v281_v31  ;;  %v2632_v29 = vmax.f32 %v2616_v51, 0.0  ;;  %v2621_v52 = vadd.f32 %v2605_v19, %v4612_v21 }
 0x497   :  { %2644 = vst [vmem:[#allocation12 + $0x28] sm:$0xff] %v2628_v45  ;;  %v2633_v16 = vmax.f32 %v2617_v34, 0.0  ;;  %v2634_v17 = vmax.f32 %v2618_v15, 0.0  ;;  %v2635_v61 = vmax.f32 %v2619_v53, 0.0 }
 0x498   :  { %2645 = vst [vmem:[#allocation12 + $0x30] sm:$0xff] %v2629_v13  ;;  %v2622_v37 = vadd.f32 %v2606_v50, %v286_v14  ;;  %v2636_v24 = vmax.f32 %v2620_v9, 0.0  ;;  %v2637_v49 = vmax.f32 %v2621_v52, 0.0 }
 0x499   :  { %2646 = vst [vmem:[#allocation12 + $0x38] sm:$0xff] %v2630_v43 }
 0x49a   :  { %2647 = vst [vmem:[#allocation12 + $0x40] sm:$0xff] %v2631_v20  ;;  %v2638_v47 = vmax.f32 %v2622_v37, 0.0 }
 0x49b   :  { %2648 = vst [vmem:[#allocation12 + $0x48] sm:$0xff] %v2632_v29 }
 0x49c   :  { %2649 = vst [vmem:[#allocation12 + $0x50] sm:$0xff] %v2633_v16 }
 0x49d   :  { %2650 = vst [vmem:[#allocation12 + $0x58] sm:$0xff] %v2634_v17 }
 0x49e   :  { %2651 = vst [vmem:[#allocation12 + $0x60] sm:$0xff] %v2635_v61 }
 0x49f   :  { %2652 = vst [vmem:[#allocation12 + $0x68] sm:$0xff] %v2636_v24 }
 0x4a0   :  { %2653 = vst [vmem:[#allocation12 + $0x70] sm:$0xff] %v2637_v49 }
 0x4a1   :  { %2654 = vst [vmem:[#allocation12 + $0x78] sm:$0xff] %v2638_v47 }
 0x4a2   :  { %2667 = dma.vmem_to_hbm [thread:$0]  %s2660_s4, 2048, %s2662_s13, [#allocation5], %s3311_s26, %s3311_s26, %s3312_s6  }
 0x4a3   :  { %3306 = dma.done.wait [#allocation5], 2048  }
 0x4a4   :  { %3307 = vsyncadd [#allocation5], 4294965248 }
 0x4a5   :  { %2672 = vsyncpa [#allocation4], 1 }
 0x4a6   :  { %2673 = vsyncpa [#allocation7], 1 }
 0x4a7   :  { %2674 = vsyncpa [#allocation10], 1 }
 0x4a8   :  { %2675 = vsyncpa [#allocation5], 1 }

</bundles_post_ra>
